<compile_context>
chip_gen: v7x
topology: tpu7x:2x2x1
jax: 0.10.0
libtpu: 0.0.40
codegen_flags: <defaults>
</compile_context>

<pallas_src>
import jax
import jax.numpy as jnp
from jax import lax
from jax.experimental import pallas as pl
from jax.experimental.pallas import tpu as pltpu

NEG_SLOPE = 0.01
EPS = 1e-5


def _leaky_relu(x):
    return jnp.where(x > 0, x, NEG_SLOPE * x)


def _graph_norm(H, gn_ref):
    # GraphNorm (per-graph, per-channel): gamma * (x - alpha*mean) / sqrt(var + eps) + beta
    # H: (Bt, N, C); full graph is resident in the block, so mean/var over axis=1 are exact.
    gamma = gn_ref[0:1, :]
    beta = gn_ref[1:2, :]
    alpha = gn_ref[2:3, :]
    mean = jnp.mean(H, axis=1, keepdims=True)
    sub = H - alpha * mean
    var = jnp.mean(sub * sub, axis=1, keepdims=True)
    return gamma * sub * lax.rsqrt(var + EPS) + beta


def _transform(Z, W):
    # Per-node channel transform: (Bt*N, Cin) @ (Cin, Cout), f32.
    bt, n, cin = Z.shape
    out = jnp.dot(Z.reshape(bt * n, cin), W, preferred_element_type=jnp.float32)
    return out.reshape(bt, n, W.shape[1])


def _aggregate(A_bf16, Z):
    # Neighborhood aggregation with the pre-normalized adjacency.
    # bf16 MXU inputs, f32 accumulation.
    return jnp.einsum('bij,bjc->bic', A_bf16, Z.astype(jnp.bfloat16),
                      preferred_element_type=jnp.float32)


def _graph_conv(A_bf16, Z, W):
    # (A @ Z) @ W == A @ (Z @ W); contract the N^2-sized matmul against the
    # smaller of (in, out) channel widths.
    in_c, out_c = W.shape
    if out_c < in_c:
        return _aggregate(A_bf16, _transform(Z, W))
    return _transform(_aggregate(A_bf16, Z), W)


def spiral_mesh_kernel(a_ref, x_ref, w1_ref, w2_ref, wc_ref, gn1_ref, gn2_ref, o_ref):
    A = a_ref[...]            # (Bt, N, N) bf16
    X = x_ref[...]            # (Bt, N, in_dim) f32

    # GraphConv1 (bias=False, norm='both') + LeakyReLU + GraphNorm
    H = _graph_conv(A, X, w1_ref[...])
    H = _leaky_relu(H)
    H = _graph_norm(H, gn1_ref)

    # GraphConv2 + LeakyReLU + GraphNorm
    H = _graph_conv(A, H, w2_ref[...])
    H = _leaky_relu(H)
    H = _graph_norm(H, gn2_ref)

    # Readout: hstack(mean_nodes, max_nodes, min_nodes) -> single fused classifier matmul.
    feats = jnp.concatenate(
        [jnp.mean(H, axis=1), jnp.max(H, axis=1), jnp.min(H, axis=1)], axis=-1)  # (Bt, 3*h2)
    y = jnp.dot(feats, wc_ref[...], preferred_element_type=jnp.float32)          # (Bt, out_dim)
    o_ref[...] = y.reshape(y.shape[0], 1, y.shape[1])


def _pick_block_batch(B, N, in_dim, max_bt=8, vmem_budget_bytes=8 << 20):
    # Double-buffered per-graph footprint of the pipelined inputs (bf16 A + f32 X).
    per_graph = 2 * (N * N * 2) + 2 * (N * in_dim * 4)
    bt = max(1, min(max_bt, B, vmem_budget_bytes // max(per_graph, 1)))
    while B % bt:
        bt -= 1
    return bt


def spiral_mesh_reader(a_norm, x, params, *, block_batch=None):
    W1, W2, Wc, gn1, gn2 = params
    B, N, _ = a_norm.shape
    in_dim = x.shape[-1]
    out_dim = Wc.shape[1]

    a_bf16 = a_norm.astype(jnp.bfloat16)   # halve HBM bytes for the dominant input
    bt = block_batch or _pick_block_batch(B, N, in_dim)
    assert B % bt == 0, (B, bt)

    def full_spec(shape):
        nd = len(shape)
        return pl.BlockSpec(shape, lambda g: (0,) * nd)

    out = pl.pallas_call(
        spiral_mesh_kernel,
        out_shape=jax.ShapeDtypeStruct((B, 1, out_dim), jnp.float32),
        grid=(B // bt,),
        in_specs=[
            pl.BlockSpec((bt, N, N), lambda g: (g, 0, 0)),
            pl.BlockSpec((bt, N, in_dim), lambda g: (g, 0, 0)),
            full_spec(W1.shape), full_spec(W2.shape), full_spec(Wc.shape),
            full_spec(gn1.shape), full_spec(gn2.shape),
        ],
        out_specs=pl.BlockSpec((bt, 1, out_dim), lambda g: (g, 0, 0)),
        compiler_params=pltpu.CompilerParams(
            dimension_semantics=("parallel",)),   # graphs are independent -> megacore
    )(a_bf16, x, W1, W2, Wc, gn1, gn2)
    return out.reshape(B, out_dim)


def _reference(a_norm, x, params):
    W1, W2, Wc, gn1, gn2 = params
    A = a_norm.astype(jnp.bfloat16).astype(jnp.float32)   # same bf16-quantized A the kernel uses

    def gn(H, p):
        gamma, beta, alpha = p[0], p[1], p[2]
        mean = jnp.mean(H, axis=1, keepdims=True)
        sub = H - alpha * mean
        var = jnp.mean(sub * sub, axis=1, keepdims=True)
        return gamma * sub / jnp.sqrt(var + EPS) + beta

    H = jnp.einsum('bij,bjf->bif', A, x) @ W1
    H = jnp.where(H > 0, H, NEG_SLOPE * H)
    H = gn(H, gn1)
    H = jnp.einsum('bij,bjf->bif', A, H) @ W2
    H = jnp.where(H > 0, H, NEG_SLOPE * H)
    H = gn(H, gn2)
    feats = jnp.concatenate(
        [jnp.mean(H, axis=1), jnp.max(H, axis=1), jnp.min(H, axis=1)], axis=-1)
    return feats @ Wc


if __name__ == "__main__":
    key = jax.random.PRNGKey(0)
    B, N = 16, 16
    in_dim, hidden_dim, out_dim = 8, 32, 4
    h2 = hidden_dim // 2
    ks = jax.random.split(key, 10)

    # Structural adjacency (row=dst, col=src); self-loops ensure nonzero degrees.
    adj = (jax.random.uniform(ks[0], (B, N, N)) < 0.3).astype(jnp.float32)
    adj = jnp.maximum(adj, jnp.broadcast_to(jnp.eye(N)[None], adj.shape))
    edge_w = jax.random.uniform(ks[1], (B, N, N), minval=0.5, maxval=1.5) * adj

    in_deg = jnp.maximum(jnp.sum(adj, axis=2), 1.0)     # (B, N) per dst
    out_deg = jnp.maximum(jnp.sum(adj, axis=1), 1.0)    # (B, N) per src
    a_norm = (edge_w * (in_deg[:, :, None] ** -0.5)
              * (out_deg[:, None, :] ** -0.5)).astype(jnp.float32)

    x = jax.random.normal(ks[2], (B, N, in_dim), dtype=jnp.float32)

    # GraphConv / Linear weights (no bias).
    W1 = (jax.random.normal(ks[3], (in_dim, hidden_dim)) / jnp.sqrt(in_dim)).astype(jnp.float32)
    W2 = (jax.random.normal(ks[4], (hidden_dim, h2)) / jnp.sqrt(hidden_dim)).astype(jnp.float32)
    Wc = (jax.random.normal(ks[5], (out_dim, 3 * h2)) / jnp.sqrt(3 * h2)).T.astype(jnp.float32)

    # GraphNorm learnables packed as rows [gamma; beta; alpha] (randomized to exercise them).
    gn1 = jnp.stack([
        1.0 + 0.1 * jax.random.normal(ks[6], (hidden_dim,)),
        0.1 * jax.random.normal(ks[7], (hidden_dim,)),
        jnp.ones((hidden_dim,)),
    ]).astype(jnp.float32)
    gn2 = jnp.stack([
        1.0 + 0.1 * jax.random.normal(ks[8], (h2,)),
        0.1 * jax.random.normal(ks[9], (h2,)),
        jnp.ones((h2,)),
    ]).astype(jnp.float32)

    params = (W1, W2, Wc, gn1, gn2)

    y = spiral_mesh_reader(a_norm, x, params)
    y = jax.block_until_ready(y)

    y_ref = _reference(a_norm, x, params)
    assert y.shape == (B, out_dim)
    # bf16 operands feed the aggregation matmuls -> compare at bf16-level tolerance.
    assert jnp.allclose(y, y_ref, rtol=2e-2, atol=2e-2), float(jnp.max(jnp.abs(y - y_ref)))
    print("KERNEL_OK")
</pallas_src>

<mosaic_0001>
module attributes {stable_mosaic.version = 11 : i64} {
  func.func @spiral_mesh_kernel(%arg0: i32, %arg1: memref<8x16x16xbf16, #tpu.memory_space<vmem>>, %arg2: memref<8x16x8xf32, #tpu.memory_space<vmem>>, %arg3: memref<8x32xf32, #tpu.memory_space<vmem>>, %arg4: memref<32x16xf32, #tpu.memory_space<vmem>>, %arg5: memref<48x4xf32, #tpu.memory_space<vmem>>, %arg6: memref<3x32xf32, #tpu.memory_space<vmem>>, %arg7: memref<3x16xf32, #tpu.memory_space<vmem>>, %arg8: memref<8x1x4xf32, #tpu.memory_space<vmem>>) attributes {dimension_semantics = [#tpu.dimension_semantics<parallel>], iteration_bounds = array<i64: 2>, scalar_prefetch = 0 : i64, scratch_operands = 0 : i64, tpu.core_type = #tpu.core_type<tc>, window_params = [{transform_indices = @transform_0, window_bounds = array<i64: 8, 16, 16>}, {transform_indices = @transform_1, window_bounds = array<i64: 8, 16, 8>}, {pipeline_mode = #tpu.pipeline_mode<synchronous>, transform_indices = @transform_2, window_bounds = array<i64: 8, 32>}, {pipeline_mode = #tpu.pipeline_mode<synchronous>, transform_indices = @transform_3, window_bounds = array<i64: 32, 16>}, {pipeline_mode = #tpu.pipeline_mode<synchronous>, transform_indices = @transform_4, window_bounds = array<i64: 48, 4>}, {pipeline_mode = #tpu.pipeline_mode<synchronous>, transform_indices = @transform_5, window_bounds = array<i64: 3, 32>}, {pipeline_mode = #tpu.pipeline_mode<synchronous>, transform_indices = @transform_6, window_bounds = array<i64: 3, 16>}, {transform_indices = @transform_7, window_bounds = array<i64: 8, 1, 4>}]} {
    %c0 = arith.constant 0 : index
    %c0_0 = arith.constant 0 : index
    %c0_1 = arith.constant 0 : index
    %0 = vector.load %arg1[%c0, %c0_0, %c0_1] : memref<8x16x16xbf16, #tpu.memory_space<vmem>>, vector<8x16x16xbf16>
    %c0_2 = arith.constant 0 : index
    %c0_3 = arith.constant 0 : index
    %c0_4 = arith.constant 0 : index
    %1 = vector.load %arg2[%c0_2, %c0_3, %c0_4] : memref<8x16x8xf32, #tpu.memory_space<vmem>>, vector<8x16x8xf32>
    %c0_5 = arith.constant 0 : index
    %c0_6 = arith.constant 0 : index
    %2 = vector.load %arg3[%c0_5, %c0_6] : memref<8x32xf32, #tpu.memory_space<vmem>>, vector<8x32xf32>
    %3 = arith.truncf %1 : vector<8x16x8xf32> to vector<8x16x8xbf16>
    "tpu.trace_start"() <{level = 10 : i32, message = "bij,bjc->bic"}> : () -> ()
    %cst = arith.constant dense<0.000000e+00> : vector<8x16x8xf32>
    %4 = tpu.matmul %0, %3, %cst {dimension_numbers = #tpu.dot_dimension_numbers<[2], [1], [1], [2], [0, 0, 0, 1, 1, 2], [0], [0]>} : vector<8x16x16xbf16>, vector<8x16x8xbf16>, vector<8x16x8xf32> -> vector<8x16x8xf32>
    "tpu.trace_stop"() : () -> ()
    %5 = vector.shape_cast %4 : vector<8x16x8xf32> to vector<128x8xf32>
    %cst_7 = arith.constant dense<0.000000e+00> : vector<128x32xf32>
    %6 = tpu.matmul %5, %2, %cst_7 {dimension_numbers = #tpu.dot_dimension_numbers<[1], [0], [0], [1], [0, 0, 1, 1], [], []>} : vector<128x8xf32>, vector<8x32xf32>, vector<128x32xf32> -> vector<128x32xf32>
    %7 = vector.shape_cast %6 : vector<128x32xf32> to vector<8x16x32xf32>
    %cst_8 = arith.constant 0.000000e+00 : f32
    %8 = vector.broadcast %cst_8 : f32 to vector<8x16x32xf32>
    %9 = arith.cmpf ogt, %7, %8 : vector<8x16x32xf32>
    %cst_9 = arith.constant 0.00999999977 : f32
    %10 = vector.broadcast %cst_9 : f32 to vector<8x16x32xf32>
    %11 = arith.mulf %10, %7 : vector<8x16x32xf32>
    %12 = arith.select %9, %7, %11 : vector<8x16x32xi1>, vector<8x16x32xf32>
    %c0_10 = arith.constant 0 : index
    %c0_11 = arith.constant 0 : index
    %13 = vector.load %arg6[%c0_10, %c0_11] : memref<3x32xf32, #tpu.memory_space<vmem>>, vector<1x32xf32>
    %c1 = arith.constant 1 : index
    %c0_12 = arith.constant 0 : index
    %14 = vector.load %arg6[%c1, %c0_12] : memref<3x32xf32, #tpu.memory_space<vmem>>, vector<1x32xf32>
    %c2 = arith.constant 2 : index
    %c0_13 = arith.constant 0 : index
    %15 = vector.load %arg6[%c2, %c0_13] : memref<3x32xf32, #tpu.memory_space<vmem>>, vector<1x32xf32>
    %cst_14 = arith.constant dense<0.000000e+00> : vector<8x32xf32>
    %16 = vector.multi_reduction <add>, %12, %cst_14 [1] : vector<8x16x32xf32> to vector<8x32xf32>
    %17 = vector.shape_cast %16 : vector<8x32xf32> to vector<8x1x32xf32>
    %cst_15 = arith.constant 1.600000e+01 : f32
    %18 = vector.broadcast %cst_15 : f32 to vector<8x1x32xf32>
    %19 = arith.divf %17, %18 : vector<8x1x32xf32>
    %20 = vector.shape_cast %15 : vector<1x32xf32> to vector<1x1x32xf32>
    %21 = vector.broadcast %20 : vector<1x1x32xf32> to vector<8x1x32xf32>
    %22 = arith.mulf %21, %19 : vector<8x1x32xf32>
    %23 = vector.broadcast %22 : vector<8x1x32xf32> to vector<8x16x32xf32>
    %24 = arith.subf %12, %23 : vector<8x16x32xf32>
    %25 = arith.mulf %24, %24 : vector<8x16x32xf32>
    %cst_16 = arith.constant dense<0.000000e+00> : vector<8x32xf32>
    %26 = vector.multi_reduction <add>, %25, %cst_16 [1] : vector<8x16x32xf32> to vector<8x32xf32>
    %27 = vector.shape_cast %26 : vector<8x32xf32> to vector<8x1x32xf32>
    %cst_17 = arith.constant 1.600000e+01 : f32
    %28 = vector.broadcast %cst_17 : f32 to vector<8x1x32xf32>
    %29 = arith.divf %27, %28 : vector<8x1x32xf32>
    %30 = vector.shape_cast %13 : vector<1x32xf32> to vector<1x1x32xf32>
    %31 = vector.broadcast %30 : vector<1x1x32xf32> to vector<8x16x32xf32>
    %32 = arith.mulf %31, %24 : vector<8x16x32xf32>
    %cst_18 = arith.constant 9.99999974E-6 : f32
    %33 = vector.broadcast %cst_18 : f32 to vector<8x1x32xf32>
    %34 = arith.addf %29, %33 : vector<8x1x32xf32>
    %35 = math.rsqrt %34 : vector<8x1x32xf32>
    %36 = vector.broadcast %35 : vector<8x1x32xf32> to vector<8x16x32xf32>
    %37 = arith.mulf %32, %36 : vector<8x16x32xf32>
    %38 = vector.shape_cast %14 : vector<1x32xf32> to vector<1x1x32xf32>
    %39 = vector.broadcast %38 : vector<1x1x32xf32> to vector<8x16x32xf32>
    %40 = arith.addf %37, %39 : vector<8x16x32xf32>
    %c0_19 = arith.constant 0 : index
    %c0_20 = arith.constant 0 : index
    %41 = vector.load %arg4[%c0_19, %c0_20] : memref<32x16xf32, #tpu.memory_space<vmem>>, vector<32x16xf32>
    %42 = vector.shape_cast %40 : vector<8x16x32xf32> to vector<128x32xf32>
    %cst_21 = arith.constant dense<0.000000e+00> : vector<128x16xf32>
    %43 = tpu.matmul %42, %41, %cst_21 {dimension_numbers = #tpu.dot_dimension_numbers<[1], [0], [0], [1], [0, 0, 1, 1], [], []>} : vector<128x32xf32>, vector<32x16xf32>, vector<128x16xf32> -> vector<128x16xf32>
    %44 = vector.shape_cast %43 : vector<128x16xf32> to vector<8x16x16xf32>
    %45 = arith.truncf %44 : vector<8x16x16xf32> to vector<8x16x16xbf16>
    "tpu.trace_start"() <{level = 10 : i32, message = "bij,bjc->bic"}> : () -> ()
    %cst_22 = arith.constant dense<0.000000e+00> : vector<8x16x16xf32>
    %46 = tpu.matmul %0, %45, %cst_22 {dimension_numbers = #tpu.dot_dimension_numbers<[2], [1], [1], [2], [0, 0, 0, 1, 1, 2], [0], [0]>} : vector<8x16x16xbf16>, vector<8x16x16xbf16>, vector<8x16x16xf32> -> vector<8x16x16xf32>
    %cst_23 = arith.constant 0.000000e+00 : f32
    "tpu.trace_stop"() : () -> ()
    %47 = vector.broadcast %cst_23 : f32 to vector<8x16x16xf32>
    %48 = arith.cmpf ogt, %46, %47 : vector<8x16x16xf32>
    %cst_24 = arith.constant 0.00999999977 : f32
    %49 = vector.broadcast %cst_24 : f32 to vector<8x16x16xf32>
    %50 = arith.mulf %49, %46 : vector<8x16x16xf32>
    %51 = arith.select %48, %46, %50 : vector<8x16x16xi1>, vector<8x16x16xf32>
    %c0_25 = arith.constant 0 : index
    %c0_26 = arith.constant 0 : index
    %52 = vector.load %arg7[%c0_25, %c0_26] : memref<3x16xf32, #tpu.memory_space<vmem>>, vector<1x16xf32>
    %c1_27 = arith.constant 1 : index
    %c0_28 = arith.constant 0 : index
    %53 = vector.load %arg7[%c1_27, %c0_28] : memref<3x16xf32, #tpu.memory_space<vmem>>, vector<1x16xf32>
    %c2_29 = arith.constant 2 : index
    %c0_30 = arith.constant 0 : index
    %54 = vector.load %arg7[%c2_29, %c0_30] : memref<3x16xf32, #tpu.memory_space<vmem>>, vector<1x16xf32>
    %cst_31 = arith.constant dense<0.000000e+00> : vector<8x16xf32>
    %55 = vector.multi_reduction <add>, %51, %cst_31 [1] : vector<8x16x16xf32> to vector<8x16xf32>
    %56 = vector.shape_cast %55 : vector<8x16xf32> to vector<8x1x16xf32>
    %cst_32 = arith.constant 1.600000e+01 : f32
    %57 = vector.broadcast %cst_32 : f32 to vector<8x1x16xf32>
    %58 = arith.divf %56, %57 : vector<8x1x16xf32>
    %59 = vector.shape_cast %54 : vector<1x16xf32> to vector<1x1x16xf32>
    %60 = vector.broadcast %59 : vector<1x1x16xf32> to vector<8x1x16xf32>
    %61 = arith.mulf %60, %58 : vector<8x1x16xf32>
    %62 = vector.broadcast %61 : vector<8x1x16xf32> to vector<8x16x16xf32>
    %63 = arith.subf %51, %62 : vector<8x16x16xf32>
    %64 = arith.mulf %63, %63 : vector<8x16x16xf32>
    %cst_33 = arith.constant dense<0.000000e+00> : vector<8x16xf32>
    %65 = vector.multi_reduction <add>, %64, %cst_33 [1] : vector<8x16x16xf32> to vector<8x16xf32>
    %66 = vector.shape_cast %65 : vector<8x16xf32> to vector<8x1x16xf32>
    %cst_34 = arith.constant 1.600000e+01 : f32
    %67 = vector.broadcast %cst_34 : f32 to vector<8x1x16xf32>
    %68 = arith.divf %66, %67 : vector<8x1x16xf32>
    %69 = vector.shape_cast %52 : vector<1x16xf32> to vector<1x1x16xf32>
    %70 = vector.broadcast %69 : vector<1x1x16xf32> to vector<8x16x16xf32>
    %71 = arith.mulf %70, %63 : vector<8x16x16xf32>
    %cst_35 = arith.constant 9.99999974E-6 : f32
    %72 = vector.broadcast %cst_35 : f32 to vector<8x1x16xf32>
    %73 = arith.addf %68, %72 : vector<8x1x16xf32>
    %74 = math.rsqrt %73 : vector<8x1x16xf32>
    %75 = vector.broadcast %74 : vector<8x1x16xf32> to vector<8x16x16xf32>
    %76 = arith.mulf %71, %75 : vector<8x16x16xf32>
    %77 = vector.shape_cast %53 : vector<1x16xf32> to vector<1x1x16xf32>
    %78 = vector.broadcast %77 : vector<1x1x16xf32> to vector<8x16x16xf32>
    %79 = arith.addf %76, %78 : vector<8x16x16xf32>
    %cst_36 = arith.constant dense<0.000000e+00> : vector<8x16xf32>
    %80 = vector.multi_reduction <add>, %79, %cst_36 [1] : vector<8x16x16xf32> to vector<8x16xf32>
    %cst_37 = arith.constant 1.600000e+01 : f32
    %81 = vector.broadcast %cst_37 : f32 to vector<8x16xf32>
    %82 = arith.divf %80, %81 : vector<8x16xf32>
    %cst_38 = arith.constant dense<0xFF800000> : vector<8x16xf32>
    %83 = vector.multi_reduction <maximumf>, %79, %cst_38 [1] : vector<8x16x16xf32> to vector<8x16xf32>
    %cst_39 = arith.constant dense<0x7F800000> : vector<8x16xf32>
    %84 = vector.multi_reduction <minimumf>, %79, %cst_39 [1] : vector<8x16x16xf32> to vector<8x16xf32>
    %85 = tpu.concatenate %82, %83, %84 in 1 : vector<8x16xf32>, vector<8x16xf32>, vector<8x16xf32> -> vector<8x48xf32>
    %c0_40 = arith.constant 0 : index
    %c0_41 = arith.constant 0 : index
    %86 = vector.load %arg5[%c0_40, %c0_41] : memref<48x4xf32, #tpu.memory_space<vmem>>, vector<48x4xf32>
    %cst_42 = arith.constant dense<0.000000e+00> : vector<8x4xf32>
    %87 = tpu.matmul %85, %86, %cst_42 {dimension_numbers = #tpu.dot_dimension_numbers<[1], [0], [0], [1], [0, 0, 1, 1], [], []>} : vector<8x48xf32>, vector<48x4xf32>, vector<8x4xf32> -> vector<8x4xf32>
    %88 = vector.shape_cast %87 : vector<8x4xf32> to vector<8x1x4xf32>
    %c0_43 = arith.constant 0 : index
    %c0_44 = arith.constant 0 : index
    %c0_45 = arith.constant 0 : index
    %89 = vector.load %arg8[%c0_43, %c0_44, %c0_45] : memref<8x1x4xf32, #tpu.memory_space<vmem>>, vector<8x1x4xf32>
    tpu.vector_store %arg8[%c0_43, %c0_44, %c0_45], %88 {strides = array<i32>} : memref<8x1x4xf32, #tpu.memory_space<vmem>>, vector<8x1x4xf32>,
    return
  }
  func.func @transform_0(%arg0: i32) -> (i32, i32, i32) {
    %c0_i32 = arith.constant 0 : i32
    %c0_i32_0 = arith.constant 0 : i32
    %c0_i32_1 = arith.constant 0 : i32
    return %arg0, %c0_i32, %c0_i32_0 : i32, i32, i32
  }
  func.func @transform_1(%arg0: i32) -> (i32, i32, i32) {
    %c0_i32 = arith.constant 0 : i32
    %c0_i32_0 = arith.constant 0 : i32
    %c0_i32_1 = arith.constant 0 : i32
    return %arg0, %c0_i32, %c0_i32_0 : i32, i32, i32
  }
  func.func @transform_2(%arg0: i32) -> (i32, i32) {
    %c0_i32 = arith.constant 0 : i32
    %c0_i32_0 = arith.constant 0 : i32
    %c0_i32_1 = arith.constant 0 : i32
    return %c0_i32, %c0_i32_0 : i32, i32
  }
  func.func @transform_3(%arg0: i32) -> (i32, i32) {
    %c0_i32 = arith.constant 0 : i32
    %c0_i32_0 = arith.constant 0 : i32
    %c0_i32_1 = arith.constant 0 : i32
    return %c0_i32, %c0_i32_0 : i32, i32
  }
  func.func @transform_4(%arg0: i32) -> (i32, i32) {
    %c0_i32 = arith.constant 0 : i32
    %c0_i32_0 = arith.constant 0 : i32
    %c0_i32_1 = arith.constant 0 : i32
    return %c0_i32, %c0_i32_0 : i32, i32
  }
  func.func @transform_5(%arg0: i32) -> (i32, i32) {
    %c0_i32 = arith.constant 0 : i32
    %c0_i32_0 = arith.constant 0 : i32
    %c0_i32_1 = arith.constant 0 : i32
    return %c0_i32, %c0_i32_0 : i32, i32
  }
  func.func @transform_6(%arg0: i32) -> (i32, i32) {
    %c0_i32 = arith.constant 0 : i32
    %c0_i32_0 = arith.constant 0 : i32
    %c0_i32_1 = arith.constant 0 : i32
    return %c0_i32, %c0_i32_0 : i32, i32
  }
  func.func @transform_7(%arg0: i32) -> (i32, i32, i32) {
    %c0_i32 = arith.constant 0 : i32
    %c0_i32_0 = arith.constant 0 : i32
    %c0_i32_1 = arith.constant 0 : i32
    return %arg0, %c0_i32, %c0_i32_0 : i32, i32, i32
  }
}

</mosaic_0001>

<bundles_post_ra>
// kernel: tpu_custom_call.1
= control target key start
LH: loop header
LB: loop body
LE: loop exit
PB: predicated region body
PF: predicated region fallthrough
CT: control target
= control target key end

     0   :  { %s3124_s24 = smov 0   ;;  %s3983_s0 = inlined_call_operand.vmem [shape: bf16[16,16,16], index: 0, kind: input, shape index: {}]   ;;  %s3984_s1 = inlined_call_operand.vmem [shape: f32[16,16,8], index: 1, kind: input, shape index: {}]   ;;  %s3985_s2 = inlined_call_operand.vmem [shape: f32[8,32], index: 2, kind: input, shape index: {}]   ;;  %s3986_s3 = inlined_call_operand.vmem [shape: f32[32,16], index: 3, kind: input, shape index: {}]   ;;  %s3987_s4 = inlined_call_operand.vmem [shape: f32[48,4], index: 4, kind: input, shape index: {}]   ;;  %s3988_s5 = inlined_call_operand.vmem [shape: f32[3,32], index: 5, kind: input, shape index: {}]   ;;  %s3989_s6 = inlined_call_operand.vmem [shape: f32[3,16], index: 6, kind: input, shape index: {}]   ;;  %s3990_s7 = inlined_call_operand.vmem [shape: f32[16,1,4], index: 7, kind: output, shape index: {}]  }
   0x1 LB: > { %s2676_s25 = sadd.s32 4294967295, %s3076_s24   ;;  %p2680_p0 = scmp.ge.s32.totalorder %s3076_s24, 1  ;;  %s3076_s24 = sphi %s3124_s24, %s17_s24  }
   0x2   : > { %p251_p1 = scmp.lt.s32.totalorder %s3076_s24, 3 }
   0x4   : > { %p252_p2 = pnand %p2680_p0, %p251_p1 }
   0x5   : > { %s2681_s26 = sshll.u32 (!%p252_p2), %s2676_s25, 3  ;;  %v3078_v0 = vmov (!%p252_p2), 0.0   ;;  %vm3079_vm0 = vmmov (!%p252_p2), 0   ;;  %vm355_vm1 = vcmask (!%p252_p2), 130048   ;;  %v341_v33 = vld [vmem:[%s3985_s2] sm:$0xff] (!%p252_p2)  ;;  %vm743_vm2 = vcmask (!%p252_p2), 64512  }
   0x6   : > { %255 = sbr.rel (%p252_p2) target bundleno = 1453 (0x5ad), region = 48  ;;  %2829 = vmatprep.subr.bf16.mxu0 (!%p252_p2), %v3078_v0  ;;  %p290_p3 = scmp.lt.s32.totalorder (!%p252_p2), %s2681_s26, 15  ;;  %2835 = vmatprep.subr.bf16.mxu1 (!%p252_p2), %v3078_v0  ;;  %vm988_vm4 = vcmask (!%p252_p2), 261120  }
   0x7   : > { %2831 = vmatprep.mubr.msk.bf16.mxu0 (!%p252_p2), %vm3079_vm0, %v3078_v0  ;;  %2837 = vmatprep.mubr.msk.bf16.mxu1 (!%p252_p2), %vm3079_vm0, %v3078_v0 }
   0xd   : > { %s3992_s26 = smov (!%p290_p3, %s2681_s26), 15 }
   0xe   : > { %s2752_s27 = sshll.u32 %s3992_s26, 4  ;;  %s2751_s28 = sshll.u32 %s3992_s26, 3 }
   0xf   : > { %s3145_s8 = scalar_lea.vmem %s3984_s1, %s2752_s27  ;;  %s3150_s11 = scalar_lea.vmem %s3983_s0, %s2751_s28 }
  0x10   : > { %v325_v1 = vld [vmem:[%s3145_s8] sm:$0xff]  ;;  %v326_v2 = vld [vmem:[%s3145_s8 + $0x8] sm:$0xff]  ;;  %v327_v3 = vld [vmem:[%s3145_s8 + $0x10] sm:$0xff]  ;;  %s3081_s27 = smov 16   ;;  %s3082_s28 = smov 32  }
  0x11   : > { %v342_v4 = vpack.c.bf16 %v326_v2, %v325_v1  ;;  %v328_v5 = vld [vmem:[%s3145_s8 + $0x18] sm:$0xff]  ;;  %v3157_v7 = vld [vmem:[%s3150_s11] sm:$0xff]   ;;  %v3030_v8 = vld [vmem:[%s3150_s11 + $0x8] sm:$0xff]  }
  0x12   : > { %v343_v6 = vpack.c.bf16 %v328_v5, %v327_v3  ;;  %v329_v9 = vld [vmem:[%s3145_s8 + $0x20] sm:$0xff]  ;;  %v330_v10 = vld [vmem:[%s3145_s8 + $0x28] sm:$0xff]  ;;  %v331_v12 = vld [vmem:[%s3145_s8 + $0x30] sm:$0xff] }
  0x13   : > { %2830 = vmatpush3.bf16.msra.mxu0 %v342_v4  ;;  %v344_v11 = vpack.c.bf16 %v330_v10, %v329_v9  ;;  %v332_v13 = vld [vmem:[%s3145_s8 + $0x38] sm:$0xff]  ;;  %v333_v15 = vld [vmem:[%s3145_s8 + $0x40] sm:$0xff]  ;;  %v334_v16 = vld [vmem:[%s3145_s8 + $0x48] sm:$0xff] }
  0x14   : > { %2836 = vmatpush3.bf16.msra.mxu1 %v343_v6  ;;  %2841 = vmatprep.subr.bf16.mxu0 %v3078_v0  ;;  %v345_v14 = vpack.c.bf16 %v332_v13, %v331_v12  ;;  %v335_v17 = vld [vmem:[%s3145_s8 + $0x50] sm:$0xff]  ;;  %v336_v18 = vld [vmem:[%s3145_s8 + $0x58] sm:$0xff]  ;;  %v346_v21 = vpack.c.bf16 %v334_v16, %v333_v15  ;;  %v337_v23 = vld [vmem:[%s3145_s8 + $0x60] sm:$0xff] }
  0x15   : > { %2847 = vmatprep.subr.bf16.mxu1 %v3078_v0  ;;  %v3179_v19 = vld [vmem:[%s3150_s11 + $0x10] sm:$0xff]   ;;  %v3183_v20 = vld [vmem:[%s3150_s11 + $0x18] sm:$0xff]   ;;  %v347_v22 = vpack.c.bf16 %v336_v18, %v335_v17  ;;  %v338_v24 = vld [vmem:[%s3145_s8 + $0x68] sm:$0xff] }
  0x16   : > { %2832 = vmatmul.mubr.msk.bf16.vlgmr.msra.gmra.mrb[0].mxu0 %vm355_vm1, %v3157_v7  ;;  %v339_v25 = vld [vmem:[%s3145_s8 + $0x70] sm:$0xff]  ;;  %v340_v26 = vld [vmem:[%s3145_s8 + $0x78] sm:$0xff]  ;;  %v3199_v27 = vld [vmem:[%s3150_s11 + $0x20] sm:$0xff]   ;;  %v348_v29 = vpack.c.bf16 %v338_v24, %v337_v23  ;;  %s306_s8 = scalar_lea.vmem %s3990_s7, %s3992_s26 }
  0x17   : > { %2838 = vmatmul.mubr.msk.bf16.vlgmr.msra.gmra.mrb[0].mxu1 %vm355_vm1, %v3030_v8  ;;  %2842 = vmatpush3.bf16.msra.mxu0 %v344_v11  ;;  %v3203_v28 = vld [vmem:[%s3150_s11 + $0x28] sm:$0xff]   ;;  %v349_v30 = vpack.c.bf16 %v340_v26, %v339_v25  ;;  %v3214_v31 = vld [vmem:[%s3150_s11 + $0x30] sm:$0xff]   ;;  %v3217_v32 = vld [vmem:[%s3150_s11 + $0x38] sm:$0xff]  }
  0x18   : > { %2843 = vmatprep.mubr.msk.bf16.mxu0 %vm3079_vm0, %v3078_v0  ;;  %2848 = vmatpush3.bf16.msra.mxu1 %v345_v14  ;;  %v1294_v3 = vld [vmem:[%s3986_s3] sm:$0xff]  ;;  %v1295_v4 = vld [vmem:[%s3986_s3 + $0x8] sm:$0xff]  ;;  %v1296_v6 = vld [vmem:[%s3986_s3 + $0x10] sm:$0xff] }
  0x19   : > { %2849 = vmatprep.mubr.msk.bf16.mxu1 %vm3079_vm0, %v3078_v0  ;;  %2853 = vmatprep.subr.bf16.mxu0 %v3078_v0  ;;  %v2998_v5 = vpack.c.bf16 %v1295_v4, %v1294_v3  ;;  %v1297_v8 = vld [vmem:[%s3986_s3 + $0x18] sm:$0xff] }
  0x1a   : > { %2859 = vmatprep.subr.bf16.mxu1 %v3078_v0  ;;  %v3002_v9 = vpack.c.bf16 %v1297_v8, %v1296_v6  ;;  %v3298_v6 = vld [vmem:[%s3988_s5 + $0x2] sm:$0x1] }
  0x1e   : > { %2844 = vmatmul.mubr.msk.bf16.vlgmr.msra.gmra.mrb[4].mxu0 %vm355_vm1, %v3179_v19 }
  0x1f   : > { %2850 = vmatmul.mubr.msk.bf16.vlgmr.msra.gmra.mrb[4].mxu1 %vm355_vm1, %v3183_v20  ;;  %2854 = vmatpush3.bf16.msra.mxu0 %v346_v21 }
  0x20   : > { %2855 = vmatprep.mubr.msk.bf16.mxu0 %vm3079_vm0, %v3078_v0  ;;  %2860 = vmatpush3.bf16.msra.mxu1 %v347_v22 }
  0x21   : > { %2861 = vmatprep.mubr.msk.bf16.mxu1 %vm3079_vm0, %v3078_v0  ;;  %2865 = vmatprep.subr.bf16.mxu0 %v3078_v0 }
  0x22   : > { %2871 = vmatprep.subr.bf16.mxu1 %v3078_v0 }
  0x26   : > { %2856 = vmatmul.mubr.msk.bf16.vlgmr.msra.gmra.mrb[8].mxu0 %vm355_vm1, %v3199_v27 }
  0x27   : > { %2862 = vmatmul.mubr.msk.bf16.vlgmr.msra.gmra.mrb[8].mxu1 %vm355_vm1, %v3203_v28  ;;  %2866 = vmatpush3.bf16.msra.mxu0 %v348_v29 }
  0x28   : > { %2867 = vmatprep.mubr.msk.bf16.mxu0 %vm3079_vm0, %v3078_v0  ;;  %2872 = vmatpush3.bf16.msra.mxu1 %v349_v30 }
  0x29   : > { %2873 = vmatprep.mubr.msk.bf16.mxu1 %vm3079_vm0, %v3078_v0  ;;  %2877 = vmatprep.subr.mxu0 %v341_v33 }
  0x2a   : > { %2999 = vmatprep.subr.bf16.mxu1 %v2998_v5 }
  0x2e   : > { %2868 = vmatmul.mubr.msk.bf16.vlgmr.msra.gmra.mrb[12].mxu0 %vm355_vm1, %v3214_v31 }
  0x2f   : > { %2874 = vmatmul.mubr.msk.bf16.vlgmr.msra.gmra.mrb[12].mxu1 %vm355_vm1, %v3217_v32  ;;  %2878 = vmatpush3.msra.mxu0 %v341_v33 }
  0x30   : > { %2935 = vmatprep.subr.bf16.mxu0 %v3078_v0  ;;  %3001 = vmatpush3.bf16.msra.mxu1 %v2998_v5 }
  0x31   : > { %3003 = vmatprep.subr.bf16.mxu1 %v3002_v9 }
  0x34   : > { %3005 = vmatpush3.bf16.msra.mxu1 %v3002_v9 }
  0x35   : > { %2941 = vmatprep.subr.bf16.mxu1 %v3078_v0 }
  0xe9   : > { %v393_v34 = vpop.f32.mrb[0].mxu0 }
  0xea   : > { %v2833_v35 = vpop.f32.mrb[1].mxu0  ;;  %v442_v36 = vpop.f32.mrb[0].mxu1  ;;  %2879 = vmatprep.mubr.msk.f32.mxu0 %vm743_vm2, %v393_v34  ;;  %v1078_v34 = vlaneseq }
  0xeb   : > { %v396_v37 = vpop.f32.mrb[2].mxu0  ;;  %v2839_v38 = vpop.f32.mrb[1].mxu1 }
  0xec   : > { %v2834_v39 = vpop.f32.mrb[3].mxu0  ;;  %v445_v40 = vpop.f32.mrb[2].mxu1  ;;  %2880 = vmatmul.mubr.msk.f32.vlgmr.msra.gmra.mrb[16].mxu0 %vm743_vm2, %v396_v37 }
  0xed   : > { %v2840_v41 = vpop.f32.mrb[3].mxu1  ;;  %2882 = vmatprep.mubr.msk.f32.mxu0 %vm743_vm2, %v442_v36 }
  0xf0   : > { %2883 = vmatmul.mubr.msk.f32.gmra.mrb[18].mxu0 %vm743_vm2, %v445_v40 }
  0xf1   : > { %v491_v42 = vpop.f32.mrb[4].mxu0 }
  0xf2   : > { %v2845_v43 = vpop.f32.mrb[5].mxu0  ;;  %2885 = vmatprep.mubr.msk.f32.mxu0 %vm743_vm2, %v491_v42  ;;  %v540_v44 = vpop.f32.mrb[4].mxu1 }
  0xf3   : > { %v494_v45 = vpop.f32.mrb[6].mxu0  ;;  %v2851_v46 = vpop.f32.mrb[5].mxu1 }
  0xf4   : > { %2886 = vmatmul.mubr.msk.f32.gmra.mrb[20].mxu0 %vm743_vm2, %v494_v45  ;;  %v543_v47 = vpop.f32.mrb[6].mxu1  ;;  %v2846_v48 = vpop.f32.mrb[7].mxu0 }
  0xf5   : > { %2888 = vmatprep.mubr.msk.f32.mxu0 %vm743_vm2, %v540_v44  ;;  %v2852_v49 = vpop.f32.mrb[7].mxu1 }
  0xf8   : > { %2889 = vmatmul.mubr.msk.f32.gmra.mrb[22].mxu0 %vm743_vm2, %v543_v47  ;;  %v3280_v47 = vshrl.u32 %v1078_v34, 7 }
  0xf9   : > { %v589_v50 = vpop.f32.mrb[8].mxu0 }
  0xfa   : > { %v2857_v51 = vpop.f32.mrb[9].mxu0  ;;  %2891 = vmatprep.mubr.msk.f32.mxu0 %vm743_vm2, %v589_v50  ;;  %v638_v52 = vpop.f32.mrb[8].mxu1 }
  0xfb   : > { %v592_v53 = vpop.f32.mrb[10].mxu0  ;;  %v2863_v54 = vpop.f32.mrb[9].mxu1 }
  0xfc   : > { %2892 = vmatmul.mubr.msk.f32.gmra.mrb[24].mxu0 %vm743_vm2, %v592_v53  ;;  %v641_v55 = vpop.f32.mrb[10].mxu1  ;;  %v2858_v56 = vpop.f32.mrb[11].mxu0 }
  0xfd   : > { %2894 = vmatprep.mubr.msk.f32.mxu0 %vm743_vm2, %v638_v52  ;;  %v2864_v57 = vpop.f32.mrb[11].mxu1 }
 0x100   : > { %2895 = vmatmul.mubr.msk.f32.gmra.mrb[26].mxu0 %vm743_vm2, %v641_v55 }
 0x101   : > { %v687_v58 = vpop.f32.mrb[12].mxu0 }
 0x102   : > { %v2869_v59 = vpop.f32.mrb[13].mxu0  ;;  %2897 = vmatprep.mubr.msk.f32.mxu0 %vm743_vm2, %v687_v58  ;;  %v736_v60 = vpop.f32.mrb[12].mxu1 }
 0x103   : > { %v690_v61 = vpop.f32.mrb[14].mxu0  ;;  %v2875_v62 = vpop.f32.mrb[13].mxu1 }
 0x104   : > { %2898 = vmatmul.mubr.msk.f32.gmra.mrb[28].mxu0 %vm743_vm2, %v690_v61  ;;  %v739_v63 = vpop.f32.mrb[14].mxu1  ;;  %v2870_v1 = vpop.f32.mrb[15].mxu0  ;;  %v3289_v61 = vsub.s32 0, %v3280_v47 }
 0x105   : > { %2900 = vmatprep.mubr.msk.f32.mxu0 %vm743_vm2, %v736_v60  ;;  %v2876_v2 = vpop.f32.mrb[15].mxu1 }
 0x108   : > { %2901 = vmatmul.mubr.msk.f32.gmra.mrb[30].mxu0 %vm743_vm2, %v739_v63 }
 0x109   : > { %2937 = vmatprep.mubr.msk.bf16.mxu0 %vm3079_vm0, %v3078_v0 }
 0x1bf   : > { %v2881_v10 = vpop.f32.mrb[16].mxu0 }
 0x1c0   : > { %vm938_vm3 = vcmp.gt.f32.partialorder %v2881_v10, 0.0  ;;  %v954_v11 = vmul.f32 0.01, %v2881_v10  ;;  %v858_v12 = vpop.f32.mrb[17].mxu0 }
 0x1c1   : > { %vm937_vm5 = vcmp.gt.f32.partialorder %v858_v12, 0.0  ;;  %v953_v13 = vmul.f32 0.01, %v858_v12 }
 0x1c2   : > { %v3258_v14 = vsel %vm938_vm3, %v2881_v10, %v954_v11 }
 0x1c3   : > { %v990_v15 = vsel %vm988_vm4, %v3258_v14, 0.0  ;;  %v3262_v16 = vsel %vm937_vm5, %v858_v12, %v953_v13  ;;  %v2884_v17 = vpop.f32.mrb[18].mxu0 }
 0x1c4   : > { %v989_v18 = vsel %vm988_vm4, %v3262_v16, 0.0  ;;  %vm940_vm6 = vcmp.gt.f32.partialorder %v2884_v17, 0.0  ;;  %v956_v21 = vmul.f32 0.01, %v2884_v17  ;;  %v868_v22 = vpop.f32.mrb[19].mxu0 }
 0x1c5   : > { %v991_v23 = vadd.f32 %v990_v15, %v989_v18  ;;  %vm939_vm7 = vcmp.gt.f32.partialorder %v868_v22, 0.0  ;;  %v955_v24 = vmul.f32 0.01, %v868_v22 }
 0x1c6   : > { %v3266_v25 = vsel %vm940_vm6, %v2884_v17, %v956_v21 }
 0x1c7   : > { %v992_v26 = vrot.slane %v991_v23, 4  ;;  %v999_v29 = vsel %vm988_vm4, %v3266_v25, 0.0  ;;  %v3270_v30 = vsel %vm939_vm7, %v868_v22, %v955_v24  ;;  %v2887_v33 = vpop.f32.mrb[20].mxu0 }
 0x1c8   : > { %v998_v35 = vsel %vm988_vm4, %v3270_v30, 0.0  ;;  %vm942_vm8 = vcmp.gt.f32.partialorder %v2887_v33, 0.0  ;;  %v958_v36 = vmul.f32 0.01, %v2887_v33  ;;  %v878_v37 = vpop.f32.mrb[21].mxu0 }
 0x1c9   : > { %v993_v38 = vadd.f32 %v992_v26, %v991_v23  ;;  %v1000_v39 = vadd.f32 %v999_v29, %v998_v35  ;;  %vm941_vm9 = vcmp.gt.f32.partialorder %v878_v37, 0.0  ;;  %v957_v40 = vmul.f32 0.01, %v878_v37 }
 0x1ca   : > { %v3274_v41 = vsel %vm942_vm8, %v2887_v33, %v958_v36 }
 0x1cb   : > { %v994_v42 = vrot.slane %v993_v38, 2  ;;  %v1001_v43 = vrot.slane %v1000_v39, 4  ;;  %v1008_v44 = vsel %vm988_vm4, %v3274_v41, 0.0  ;;  %v3278_v45 = vsel %vm941_vm9, %v878_v37, %v957_v40  ;;  %v2890_v46 = vpop.f32.mrb[22].mxu0 }
 0x1cc   : > { %v1007_v48 = vsel %vm988_vm4, %v3278_v45, 0.0  ;;  %vm944_vm10 = vcmp.gt.f32.partialorder %v2890_v46, 0.0  ;;  %v960_v49 = vmul.f32 0.01, %v2890_v46  ;;  %v888_v50 = vpop.f32.mrb[23].mxu0 }
 0x1cd   : > { %v995_v51 = vadd.f32 %v994_v42, %v993_v38  ;;  %v1002_v52 = vadd.f32 %v1001_v43, %v1000_v39  ;;  %v1009_v53 = vadd.f32 %v1008_v44, %v1007_v48  ;;  %vm943_vm11 = vcmp.gt.f32.partialorder %v888_v50, 0.0 }
 0x1ce   : > { %v3284_v54 = vsel %vm944_vm10, %v2890_v46, %v960_v49  ;;  %v959_v55 = vmul.f32 0.01, %v888_v50 }
 0x1cf   : > { %v996_v56 = vrot.slane %v995_v51, 1  ;;  %v1003_v57 = vrot.slane %v1002_v52, 2  ;;  %v1010_v58 = vrot.slane %v1009_v53, 4  ;;  %v1017_v59 = vsel %vm988_vm4, %v3284_v54, 0.0  ;;  %v2893_v60 = vpop.f32.mrb[24].mxu0 }
 0x1d0   : > { %v3291_v62 = vsel %vm943_vm11, %v888_v50, %v959_v55  ;;  %vm946_vm12 = vcmp.gt.f32.partialorder %v2893_v60, 0.0  ;;  %v962_v63 = vmul.f32 0.01, %v2893_v60  ;;  %v898_v1 = vpop.f32.mrb[25].mxu0 }
 0x1d1   : > { %v997_v2 = vadd.f32 %v996_v56, %v995_v51  ;;  %v1004_v3 = vadd.f32 %v1003_v57, %v1002_v52  ;;  %v1011_v4 = vadd.f32 %v1010_v58, %v1009_v53  ;;  %v1016_v5 = vsel %vm988_vm4, %v3291_v62, 0.0 }
 0x1d2   : > { %v1018_v8 = vadd.f32 %v1017_v59, %v1016_v5  ;;  %v3300_v9 = vsel %vm946_vm12, %v2893_v60, %v962_v63  ;;  %vm945_vm13 = vcmp.gt.f32.partialorder %v898_v1, 0.0  ;;  %v961_v10 = vmul.f32 0.01, %v898_v1 }
 0x1d3   : > { %v1062_v11 = vmul.f32 0.0625, %v997_v2  ;;  %v1005_v12 = vrot.slane %v1004_v3, 1  ;;  %v1012_v13 = vrot.slane %v1011_v4, 2  ;;  %v1026_v15 = vsel %vm988_vm4, %v3300_v9, 0.0  ;;  %v2896_v17 = vpop.f32.mrb[26].mxu0 }
 0x1d4   : > { %v1019_v18 = vrot.slane %v1018_v8, 4  ;;  %v3304_v21 = vsel %vm945_vm13, %v898_v1, %v961_v10  ;;  %vm948_vm14 = vcmp.gt.f32.partialorder %v2896_v17, 0.0  ;;  %v964_v22 = vmul.f32 0.01, %v2896_v17  ;;  %v908_v23 = vpop.f32.mrb[27].mxu0 }
 0x1d5   : > { %v1070_v24 = vmul.f32 %v1062_v11, %v3298_v6  ;;  %v1006_v26 = vadd.f32 %v1005_v12, %v1004_v3  ;;  %v1013_v29 = vadd.f32 %v1012_v13, %v1011_v4  ;;  %v1025_v33 = vsel %vm988_vm4, %v3304_v21, 0.0 }
 0x1d6   : > { %v1020_v34 = vadd.f32 %v1019_v18, %v1018_v8  ;;  %v1027_v35 = vadd.f32 %v1026_v15, %v1025_v33  ;;  %vm947_vm15 = vcmp.gt.f32.partialorder %v908_v23, 0.0  ;;  %v3313_v43 = vsel %vm948_vm14, %v2896_v17, %v964_v22 }
 0x1d7   : > { %v1081_v36 = vrot.slane %v1070_v24, %v3289_v61  ;;  %v1063_v37 = vmul.f32 0.0625, %v1006_v26  ;;  %v1014_v38 = vrot.slane %v1013_v29, 1  ;;  %v3310_v39 = vpop.f32.mrb[28].mxu0  ;;  %v963_v44 = vmul.f32 0.01, %v908_v23 }
 0x1d8   : > { %v1021_v40 = vrot.slane %v1020_v34, 2  ;;  %v1028_v42 = vrot.slane %v1027_v35, 4  ;;  %v3315_v46 = vpop.f32.mrb[29].mxu0  ;;  %vm950_vm2 = vcmp.gt.f32.partialorder %v3310_v39, 0.0 }
 0x1d9   : > { %v3318_v48 = vsub.f32 %v3262_v16, %v1081_v36  ;;  %v3321_v49 = vsub.f32 %v3258_v14, %v1081_v36  ;;  %v1071_v50 = vmul.f32 %v1063_v37, %v3298_v6  ;;  %v1015_v51 = vadd.f32 %v1014_v38, %v1013_v29 }
 0x1da   : > { %v1022_v52 = vadd.f32 %v1021_v40, %v1020_v34  ;;  %v1029_v53 = vadd.f32 %v1028_v42, %v1027_v35  ;;  %v3324_v55 = vsel %vm947_vm15, %v908_v23, %v963_v44  ;;  %v1035_v16 = vsel %vm988_vm4, %v3313_v43, 0.0 }
 0x1db   : > { %v1126_v56 = vmul.f32 %v3318_v48, %v3318_v48  ;;  %v1127_v57 = vmul.f32 %v3321_v49, %v3321_v49  ;;  %v3332_v58 = vpop.f32.mrb[30].mxu0  ;;  %v1085_v14 = vrot.slane %v1071_v50, %v3289_v61  ;;  %v1064_v59 = vmul.f32 0.0625, %v1015_v51 }
 0x1dc   : > { %v1023_v60 = vrot.slane %v1022_v52, 1  ;;  %v1030_v63 = vrot.slane %v1029_v53, 2  ;;  %v3335_v1 = vpop.f32.mrb[31].mxu0  ;;  %v1034_v4 = vsel %vm988_vm4, %v3324_v55, 0.0  ;;  %vm949_vm3 = vcmp.gt.f32.partialorder %v3315_v46, 0.0 }
 0x1dd   : > { %v1142_v2 = vsel %vm988_vm4, %v1126_v56, 0.0  ;;  %v1143_v3 = vsel %vm988_vm4, %v1127_v57, 0.0  ;;  %v3342_v8 = vsub.f32 %v3270_v30, %v1085_v14  ;;  %v3345_v10 = vsub.f32 %v3266_v25, %v1085_v14 }
 0x1de   : > { %v1144_v5 = vadd.f32 %v1143_v3, %v1142_v2  ;;  %v1072_v11 = vmul.f32 %v1064_v59, %v3298_v6  ;;  %v1024_v12 = vadd.f32 %v1023_v60, %v1022_v52  ;;  %v1031_v13 = vadd.f32 %v1030_v63, %v1029_v53 }
 0x1df   : > { %v1036_v15 = vadd.f32 %v1035_v16, %v1034_v4  ;;  %v1128_v18 = vmul.f32 %v3342_v8, %v3342_v8  ;;  %v1129_v22 = vmul.f32 %v3345_v10, %v3345_v10  ;;  %vm952_vm5 = vcmp.gt.f32.partialorder %v3332_v58, 0.0 }
 0x1e0   : > { %v1145_v17 = vrot.slane %v1144_v5, 4  ;;  %v1089_v23 = vrot.slane %v1072_v11, %v3289_v61  ;;  %v1065_v24 = vmul.f32 0.0625, %v1024_v12  ;;  %v1032_v30 = vrot.slane %v1031_v13, 1 }
 0x1e1   : > { %v1151_v25 = vsel %vm988_vm4, %v1128_v18, 0.0  ;;  %v1152_v29 = vsel %vm988_vm4, %v1129_v22, 0.0  ;;  %v1037_v33 = vrot.slane %v1036_v15, 4  ;;  %v965_v11 = vmul.f32 0.01, %v3315_v46 }
 0x1e2   : > { %v1146_v26 = vadd.f32 %v1145_v17, %v1144_v5  ;;  %v1153_v34 = vadd.f32 %v1152_v29, %v1151_v25  ;;  %v3356_v35 = vsub.f32 %v3278_v45, %v1089_v23  ;;  %v3359_v36 = vsub.f32 %v3274_v41, %v1089_v23 }
 0x1e3   : > { %v1073_v37 = vmul.f32 %v1065_v24, %v3298_v6  ;;  %v1033_v40 = vadd.f32 %v1032_v30, %v1031_v13  ;;  %v1038_v42 = vadd.f32 %v1037_v33, %v1036_v15  ;;  %v966_v41 = vmul.f32 0.01, %v3310_v39 }
 0x1e4   : > { %v1147_v38 = vrot.slane %v1146_v26, 2  ;;  %v1154_v44 = vrot.slane %v1153_v34, 4  ;;  %v1130_v50 = vmul.f32 %v3356_v35, %v3356_v35  ;;  %v1131_v51 = vmul.f32 %v3359_v36, %v3359_v36 }
 0x1e5   : > { %v1093_v45 = vrot.slane %v1073_v37, %v3289_v61  ;;  %v1066_v53 = vmul.f32 0.0625, %v1033_v40  ;;  %v1039_v14 = vrot.slane %v1038_v42, 2  ;;  %vm951_vm6 = vcmp.gt.f32.partialorder %v3335_v1, 0.0 }
 0x1e6   : > { %v1148_v52 = vadd.f32 %v1147_v38, %v1146_v26  ;;  %v1155_v56 = vadd.f32 %v1154_v44, %v1153_v34  ;;  %v1160_v57 = vsel %vm988_vm4, %v1130_v50, 0.0  ;;  %v1161_v16 = vsel %vm988_vm4, %v1131_v51, 0.0 }
 0x1e7   : > { %v1162_v60 = vadd.f32 %v1161_v16, %v1160_v57  ;;  %v3372_v63 = vsub.f32 %v3291_v62, %v1093_v45  ;;  %v3375_v2 = vsub.f32 %v3284_v54, %v1093_v45  ;;  %v1074_v4 = vmul.f32 %v1066_v53, %v3298_v6 }
 0x1e8   : > { %v1149_v59 = vrot.slane %v1148_v52, 1  ;;  %v1156_v3 = vrot.slane %v1155_v56, 2  ;;  %v1040_v5 = vadd.f32 %v1039_v14, %v1038_v42  ;;  %v3387_v54 = vsel %vm950_vm2, %v3310_v39, %v966_v41 }
 0x1e9   : > { %v1163_v13 = vrot.slane %v1162_v60, 4  ;;  %v1132_v15 = vmul.f32 %v3372_v63, %v3372_v63  ;;  %v1133_v17 = vmul.f32 %v3375_v2, %v3375_v2  ;;  %v1097_v62 = vrot.slane %v1074_v4, %v3289_v61 }
 0x1ea   : > { %v1150_v12 = vadd.f32 %v1149_v59, %v1148_v52  ;;  %v1157_v18 = vadd.f32 %v1156_v3, %v1155_v56  ;;  %v1041_v39 = vrot.slane %v1040_v5, 1  ;;  %v3399_v38 = vsel %vm949_vm3, %v3315_v46, %v965_v11 }
 0x1eb   : > { %v1164_v23 = vadd.f32 %v1163_v13, %v1162_v60  ;;  %v1169_v24 = vsel %vm988_vm4, %v1132_v15, 0.0  ;;  %v1170_v30 = vsel %vm988_vm4, %v1133_v17, 0.0  ;;  %v3393_v29 = vsub.f32 %v3304_v21, %v1097_v62  ;;  %v3415_v60 = vld [vmem:[%s3988_s5] ss:$0 sm:$0xff] }
 0x1ec   : > { %v1214_v22 = vmul.f32 0.0625, %v1150_v12  ;;  %v1158_v26 = vrot.slane %v1157_v18, 1  ;;  %v1171_v25 = vadd.f32 %v1170_v30, %v1169_v24  ;;  %v3396_v33 = vsub.f32 %v3300_v9, %v1097_v62 }
 0x1ed   : > { %v1165_v37 = vrot.slane %v1164_v23, 2  ;;  %v1134_v44 = vmul.f32 %v3393_v29, %v3393_v29  ;;  %v1044_v9 = vsel %vm988_vm4, %v3387_v54, 0.0  ;;  %v1042_v56 = vadd.f32 %v1041_v39, %v1040_v5 }
 0x1ee   : > { %v1242_v34 = vadd.f32 1e-05, %v1214_v22  ;;  %v1159_v40 = vadd.f32 %v1158_v26, %v1157_v18  ;;  %v1172_v42 = vrot.slane %v1171_v25, 4  ;;  %v1135_v50 = vmul.f32 %v3396_v33, %v3396_v33 }
 0x1ef   : > { %v1166_v21 = vadd.f32 %v1165_v37, %v1164_v23  ;;  %v1178_v45 = vsel %vm988_vm4, %v1134_v44, 0.0  ;;  %v1043_v57 = vsel %vm988_vm4, %v3399_v38, 0.0  ;;  %v1067_v11 = vmul.f32 0.0625, %v1042_v56 }
 0x1f0   : > { %3037 = vrsqrt.f32 %v1242_v34  ;;  %v1215_v51 = vmul.f32 0.0625, %v1159_v40  ;;  %v1173_v52 = vadd.f32 %v1172_v42, %v1171_v25  ;;  %v1179_v46 = vsel %vm988_vm4, %v1135_v50, 0.0 }
 0x1f1   : > { %v1167_v53 = vrot.slane %v1166_v21, 1  ;;  %v1180_v41 = vadd.f32 %v1179_v46, %v1178_v45  ;;  %v1045_v59 = vadd.f32 %v1044_v9, %v1043_v57  ;;  %v968_v12 = vmul.f32 0.01, %v3332_v58 }
 0x1f2   : > { %v1243_v16 = vadd.f32 1e-05, %v1215_v51  ;;  %v1174_v14 = vrot.slane %v1173_v52, 2  ;;  %v1075_v18 = vmul.f32 %v1067_v11, %v3298_v6  ;;  %v1226_v22 = vmul.f32 %v3415_v60, %v3318_v48 }
 0x1f3   : > { %v1168_v3 = vadd.f32 %v1167_v53, %v1166_v21  ;;  %v1181_v4 = vrot.slane %v1180_v41, 4  ;;  %v1046_v13 = vrot.slane %v1045_v59, 4  ;;  %v3421_v62 = vsel %vm952_vm5, %v3332_v58, %v968_v12 }
 0x1f4   : > { %3039 = vrsqrt.f32 %v1243_v16  ;;  %v1175_v5 = vadd.f32 %v1174_v14, %v1173_v52  ;;  %v967_v30 = vmul.f32 0.01, %v3335_v1  ;;  %v1227_v26 = vmul.f32 %v3415_v60, %v3321_v49 }
 0x1f5   : > { %v1216_v15 = vmul.f32 0.0625, %v1168_v3  ;;  %v1182_v17 = vadd.f32 %v1181_v4, %v1180_v41  ;;  %v1047_v24 = vadd.f32 %v1046_v13, %v1045_v59  ;;  %v1101_v37 = vrot.slane %v1075_v18, %v3289_v61 }
 0x1f6   : > { %v1176_v23 = vrot.slane %v1175_v5, 1  ;;  %v1053_v58 = vsel %vm988_vm4, %v3421_v62, 0.0  ;;  %v3434_v48 = vsel %vm951_vm6, %v3335_v1, %v967_v30  ;;  %v1228_v45 = vmul.f32 %v3415_v60, %v3342_v8 }
 0x1f7   : > { %v1244_v25 = vadd.f32 1e-05, %v1216_v15  ;;  %v1183_v34 = vrot.slane %v1182_v17, 2  ;;  %v1048_v40 = vrot.slane %v1047_v24, 2  ;;  %v3437_v50 = vsub.f32 %v3324_v55, %v1101_v37  ;;  %v3451_v55 = vld [vmem:[%s3988_s5 + $0x1] ss:$0 sm:$0xff] }
 0x1f8   : > { %v1177_v39 = vadd.f32 %v1176_v23, %v1175_v5  ;;  %v3440_v49 = vsub.f32 %v3313_v43, %v1101_v37  ;;  %v1229_v43 = vmul.f32 %v3415_v60, %v3345_v10  ;;  %v1052_v8 = vsel %vm988_vm4, %v3434_v48, 0.0 }
 0x1f9   : > { %3041 = vrsqrt.f32 %v1244_v25  ;;  %v1184_v44 = vadd.f32 %v1183_v34, %v1182_v17  ;;  %v1049_v52 = vadd.f32 %v1048_v40, %v1047_v24  ;;  %v1136_v1 = vmul.f32 %v3437_v50, %v3437_v50 }
 0x1fa   : > { %v3038_v42 = vpop.eup %3037  ;;  %v1217_v51 = vmul.f32 0.0625, %v1177_v39  ;;  %v1137_v53 = vmul.f32 %v3440_v49, %v3440_v49  ;;  %v1054_v59 = vadd.f32 %v1053_v58, %v1052_v8  ;;  %v1230_v23 = vmul.f32 %v3415_v60, %v3356_v35 }
 0x1fb   : > { %v1258_v21 = vmul.f32 %v3038_v42, %v1226_v22  ;;  %v1259_v9 = vmul.f32 %v3038_v42, %v1227_v26  ;;  %v1185_v46 = vrot.slane %v1184_v44, 1  ;;  %v1050_v56 = vrot.slane %v1049_v52, 1 }
 0x1fc   : > { %v1245_v41 = vadd.f32 1e-05, %v1217_v51  ;;  %v1187_v16 = vsel %vm988_vm4, %v1136_v1, 0.0  ;;  %v1188_v14 = vsel %vm988_vm4, %v1137_v53, 0.0  ;;  %v1055_v10 = vrot.slane %v1054_v59, 4 }
 0x1fd   : > { %v1186_v57 = vadd.f32 %v1185_v46, %v1184_v44  ;;  %v1189_v4 = vadd.f32 %v1188_v14, %v1187_v16  ;;  %v1051_v11 = vadd.f32 %v1050_v56, %v1049_v52  ;;  %v1278_v12 = vadd.f32 %v3451_v55, %v1258_v21 }
 0x1fe   : > { %v3040_v3 = vpop.eup %3039  ;;  %3043 = vrsqrt.f32 %v1245_v41  ;;  %v1279_v15 = vadd.f32 %v3451_v55, %v1259_v9  ;;  %v1056_v30 = vadd.f32 %v1055_v10, %v1054_v59  ;;  %v1231_v25 = vmul.f32 %v3415_v60, %v3359_v36 }
 0x1ff   : > { %v1260_v5 = vmul.f32 %v3040_v3, %v1228_v45  ;;  %v1218_v13 = vmul.f32 0.0625, %v1186_v57  ;;  %v1190_v17 = vrot.slane %v1189_v4, 4  ;;  %v1068_v18 = vmul.f32 0.0625, %v1051_v11  ;;  %2911 = vmatprep.mubr.msk.f32.mxu1 %vm988_vm4, %v1278_v12 }
 0x200   : > { %v1261_v22 = vmul.f32 %v3040_v3, %v1229_v43  ;;  %2912 = vmatmul.mubr.msk.f32.vlgmr.msra.gmra.mrb[16].mxu1 %vm988_vm4, %v1279_v15  ;;  %v1057_v58 = vrot.slane %v1056_v30, 2  ;;  %v1232_v46 = vmul.f32 %v3415_v60, %v3372_v63  ;;  %v1233_v1 = vmul.f32 %v3415_v60, %v3375_v2 }
 0x201   : > { %v1246_v24 = vadd.f32 1e-05, %v1218_v13  ;;  %v1280_v26 = vadd.f32 %v3451_v55, %v1260_v5  ;;  %v1191_v34 = vadd.f32 %v1190_v17, %v1189_v4  ;;  %v1076_v37 = vmul.f32 %v1068_v18, %v3298_v6 }
 0x202   : > { %v1281_v39 = vadd.f32 %v3451_v55, %v1261_v22  ;;  %v1058_v9 = vadd.f32 %v1057_v58, %v1056_v30  ;;  %v1234_v12 = vmul.f32 %v3415_v60, %v3393_v29  ;;  %v1235_v5 = vmul.f32 %v3415_v60, %v3396_v33 }
 0x203   : > { %v3042_v40 = vpop.eup %3041  ;;  %3045 = vrsqrt.f32 %v1246_v24  ;;  %2914 = vmatprep.mubr.msk.f32.mxu1 %vm988_vm4, %v1280_v26  ;;  %v1192_v42 = vrot.slane %v1191_v34, 2  ;;  %v1105_v44 = vrot.slane %v1076_v37, %v3289_v61 }
 0x204   : > { %v1262_v35 = vmul.f32 %v3042_v40, %v1230_v23  ;;  %v1263_v21 = vmul.f32 %v3042_v40, %v1231_v25  ;;  %2915 = vmatmul.mubr.msk.f32.gmra.mrb[18].mxu1 %vm988_vm4, %v1281_v39  ;;  %v1059_v53 = vrot.slane %v1058_v9, 1 }
 0x205   : > { %v1193_v51 = vadd.f32 %v1192_v42, %v1191_v34  ;;  %v3474_v36 = vsub.f32 %v3399_v38, %v1105_v44  ;;  %v3477_v52 = vsub.f32 %v3387_v54, %v1105_v44 }
 0x206   : > { %v1282_v45 = vadd.f32 %v3451_v55, %v1262_v35  ;;  %v1283_v43 = vadd.f32 %v3451_v55, %v1263_v21  ;;  %v1060_v57 = vadd.f32 %v1059_v53, %v1058_v9 }
 0x207   : > { %v1194_v56 = vrot.slane %v1193_v51, 1  ;;  %v1138_v38 = vmul.f32 %v3474_v36, %v3474_v36  ;;  %v1139_v54 = vmul.f32 %v3477_v52, %v3477_v52 }
 0x208   : > { %v3044_v41 = vpop.eup %3043  ;;  %2917 = vmatprep.mubr.msk.f32.mxu1 %vm988_vm4, %v1282_v45  ;;  %v1069_v3 = vmul.f32 0.0625, %v1060_v57  ;;  %v1239_v57 = vmul.f32 %v3415_v60, %v3477_v52 }
 0x209   : > { %v1264_v8 = vmul.f32 %v3044_v41, %v1232_v46  ;;  %2918 = vmatmul.mubr.msk.f32.gmra.mrb[20].mxu1 %vm988_vm4, %v1283_v43  ;;  %v1265_v63 = vmul.f32 %v3044_v41, %v1233_v1  ;;  %v1195_v16 = vadd.f32 %v1194_v56, %v1193_v51  ;;  %v1196_v2 = vsel %vm988_vm4, %v1138_v38, 0.0 }
 0x20a   : > { %v1197_v14 = vsel %vm988_vm4, %v1139_v54, 0.0  ;;  %v1077_v17 = vmul.f32 %v1069_v3, %v3298_v6 }
 0x20b   : > { %v1198_v59 = vadd.f32 %v1197_v14, %v1196_v2  ;;  %v1284_v4 = vadd.f32 %v3451_v55, %v1264_v8  ;;  %v1285_v11 = vadd.f32 %v3451_v55, %v1265_v63  ;;  %v1219_v13 = vmul.f32 0.0625, %v1195_v16 }
 0x20c   : > { %v1109_v30 = vrot.slane %v1077_v17, %v3289_v61  ;;  %v1238_v8 = vmul.f32 %v3415_v60, %v3474_v36 }
 0x20d   : > { %v3046_v10 = vpop.eup %3045  ;;  %v1199_v15 = vrot.slane %v1198_v59, 4  ;;  %2920 = vmatprep.mubr.msk.f32.mxu1 %vm988_vm4, %v1284_v4  ;;  %v1247_v22 = vadd.f32 1e-05, %v1219_v13 }
 0x20e   : > { %v1266_v18 = vmul.f32 %v3046_v10, %v1234_v12  ;;  %2921 = vmatmul.mubr.msk.f32.gmra.mrb[22].mxu1 %vm988_vm4, %v1285_v11  ;;  %v1267_v23 = vmul.f32 %v3046_v10, %v1235_v5  ;;  %v1124_v25 = vsub.f32 %v3434_v48, %v1109_v30  ;;  %v1125_v6 = vsub.f32 %v3421_v62, %v1109_v30  ;;  %v3069_v30 = vld [vmem:[%s3150_s11 + $0x8] sm:$0xff]  }
 0x20f   : > { %v1200_v24 = vadd.f32 %v1199_v15, %v1198_v59  ;;  %3047 = vrsqrt.f32 %v1247_v22  ;;  %v1236_v48 = vmul.f32 %v3415_v60, %v3437_v50  ;;  %v1237_v62 = vmul.f32 %v3415_v60, %v3440_v49 }
 0x210   : > { %v1286_v29 = vadd.f32 %v3451_v55, %v1266_v18  ;;  %v1287_v33 = vadd.f32 %v3451_v55, %v1267_v23  ;;  %v1140_v37 = vmul.f32 %v1124_v25, %v1124_v25  ;;  %v1141_v39 = vmul.f32 %v1125_v6, %v1125_v6 }
 0x211   : > { %v1201_v26 = vrot.slane %v1200_v24, 2  ;;  %v1240_v4 = vmul.f32 %v3415_v60, %v1124_v25  ;;  %v1241_v36 = vmul.f32 %v3415_v60, %v1125_v6 }
 0x212   : > { %2923 = vmatprep.mubr.msk.f32.mxu1 %vm988_vm4, %v1286_v29  ;;  %v1205_v58 = vsel %vm988_vm4, %v1140_v37, 0.0  ;;  %v1206_v35 = vsel %vm988_vm4, %v1141_v39, 0.0 }
 0x213   : > { %v1202_v34 = vadd.f32 %v1201_v26, %v1200_v24  ;;  %2924 = vmatmul.mubr.msk.f32.gmra.mrb[24].mxu1 %vm988_vm4, %v1287_v33  ;;  %v1207_v42 = vadd.f32 %v1206_v35, %v1205_v58 }
 0x215   : > { %v1203_v40 = vrot.slane %v1202_v34, 1  ;;  %v1208_v21 = vrot.slane %v1207_v42, 4 }
 0x217   : > { %v1204_v44 = vadd.f32 %v1203_v40, %v1202_v34  ;;  %v1209_v45 = vadd.f32 %v1208_v21, %v1207_v42 }
 0x219   : > { %v1220_v9 = vmul.f32 0.0625, %v1204_v44  ;;  %v3048_v51 = vpop.eup %3047  ;;  %v1210_v43 = vrot.slane %v1209_v45, 2 }
 0x21a   : > { %v1268_v46 = vmul.f32 %v3048_v51, %v1236_v48  ;;  %v1269_v53 = vmul.f32 %v3048_v51, %v1237_v62 }
 0x21b   : > { %v1248_v1 = vadd.f32 1e-05, %v1220_v9  ;;  %v1211_v38 = vadd.f32 %v1210_v43, %v1209_v45 }
 0x21c   : > { %v1288_v41 = vadd.f32 %v3451_v55, %v1268_v46  ;;  %v1289_v56 = vadd.f32 %v3451_v55, %v1269_v53 }
 0x21d   : > { %3049 = vrsqrt.f32 %v1248_v1  ;;  %v1212_v54 = vrot.slane %v1211_v38, 1 }
 0x21e   : > { %2926 = vmatprep.mubr.msk.f32.mxu1 %vm988_vm4, %v1288_v41 }
 0x21f   : > { %2927 = vmatmul.mubr.msk.f32.gmra.mrb[26].mxu1 %vm988_vm4, %v1289_v56  ;;  %v1213_v50 = vadd.f32 %v1212_v54, %v1211_v38 }
 0x221   : > { %v1221_v49 = vmul.f32 0.0625, %v1213_v50 }
 0x223   : > { %v1249_v63 = vadd.f32 1e-05, %v1221_v49 }
 0x225   : > { %3051 = vrsqrt.f32 %v1249_v63 }
 0x227   : > { %v3050_v16 = vpop.eup %3049 }
 0x228   : > { %v1270_v2 = vmul.f32 %v3050_v16, %v1238_v8  ;;  %v1271_v14 = vmul.f32 %v3050_v16, %v1239_v57 }
 0x22a   : > { %v1290_v59 = vadd.f32 %v3451_v55, %v1270_v2  ;;  %v1291_v3 = vadd.f32 %v3451_v55, %v1271_v14 }
 0x22c   : > { %2929 = vmatprep.mubr.msk.f32.mxu1 %vm988_vm4, %v1290_v59 }
 0x22d   : > { %2930 = vmatmul.mubr.msk.f32.gmra.mrb[28].mxu1 %vm988_vm4, %v1291_v3 }
 0x22f   : > { %v3052_v11 = vpop.eup %3051 }
 0x230   : > { %v1272_v12 = vmul.f32 %v3052_v11, %v1240_v4  ;;  %v1273_v52 = vmul.f32 %v3052_v11, %v1241_v36 }
 0x232   : > { %v1292_v5 = vadd.f32 %v3451_v55, %v1272_v12  ;;  %v1293_v13 = vadd.f32 %v3451_v55, %v1273_v52 }
 0x234   : > { %2932 = vmatprep.mubr.msk.f32.mxu1 %vm988_vm4, %v1292_v5 }
 0x235   : > { %2933 = vmatmul.mubr.msk.f32.gmra.mrb[30].mxu1 %vm988_vm4, %v1293_v13 }
 0x236   : > { %2943 = vmatprep.mubr.msk.bf16.mxu1 %vm3079_vm0, %v3078_v0 }
 0x2d3   : > { %v2913_v10 = vpop.f32.mrb[16].mxu1 }
 0x2d4   : > { %v1412_v15 = vpop.f32.mrb[17].mxu1 }
 0x2d5   : > { %v1491_v17 = vpack.c.bf16 %v2913_v10, %v1412_v15 }
 0x2d7   : > { %v2916_v18 = vpop.f32.mrb[18].mxu1  ;;  %2936 = vmatpush3.bf16.msra.mxu0 %v1491_v17 }
 0x2d8   : > { %v1422_v60 = vpop.f32.mrb[19].mxu1  ;;  %2947 = vmatprep.subr.bf16.mxu0 %v3078_v0 }
 0x2d9   : > { %v1492_v22 = vpack.c.bf16 %v2916_v18, %v1422_v60 }
 0x2da   : > { %2938 = vmatmul.mubr.msk.bf16.vlgmr.msra.gmra.mrb[32].mxu0 %vm355_vm1, %v3157_v7 }
 0x2db   : > { %2942 = vmatpush3.bf16.msra.mxu1 %v1492_v22  ;;  %2949 = vmatprep.mubr.msk.bf16.mxu0 %vm3079_vm0, %v3078_v0 }
 0x2dc   : > { %v2919_v55 = vpop.f32.mrb[20].mxu1  ;;  %2953 = vmatprep.subr.bf16.mxu1 %v3078_v0 }
 0x2dd   : > { %v1432_v23 = vpop.f32.mrb[21].mxu1 }
 0x2de   : > { %v1493_v24 = vpack.c.bf16 %v2919_v55, %v1432_v23  ;;  %2944 = vmatmul.mubr.msk.bf16.vlgmr.msra.gmra.mrb[32].mxu1 %vm355_vm1, %v3069_v30 }
 0x2df   : > { %2955 = vmatprep.mubr.msk.bf16.mxu1 %vm3079_vm0, %v3078_v0 }
 0x2e0   : > { %2948 = vmatpush3.bf16.msra.mxu0 %v1493_v24 }
 0x2e1   : > { %v2922_v29 = vpop.f32.mrb[22].mxu1  ;;  %2959 = vmatprep.subr.bf16.mxu0 %v3078_v0 }
 0x2e2   : > { %v1442_v7 = vpop.f32.mrb[23].mxu1 }
 0x2e3   : > { %v1494_v33 = vpack.c.bf16 %v2922_v29, %v1442_v7  ;;  %2950 = vmatmul.mubr.msk.bf16.vlgmr.msra.gmra.mrb[36].mxu0 %vm355_vm1, %v3179_v19 }
 0x2e4   : > { %2961 = vmatprep.mubr.msk.bf16.mxu0 %vm3079_vm0, %v3078_v0 }
 0x2e5   : > { %2954 = vmatpush3.bf16.msra.mxu1 %v1494_v33 }
 0x2e6   : > { %v2925_v26 = vpop.f32.mrb[24].mxu1  ;;  %2965 = vmatprep.subr.bf16.mxu1 %v3078_v0 }
 0x2e7   : > { %v1452_v25 = vpop.f32.mrb[25].mxu1 }
 0x2e8   : > { %v1495_v6 = vpack.c.bf16 %v2925_v26, %v1452_v25  ;;  %2956 = vmatmul.mubr.msk.bf16.vlgmr.msra.gmra.mrb[36].mxu1 %vm355_vm1, %v3183_v20 }
 0x2e9   : > { %2967 = vmatprep.mubr.msk.bf16.mxu1 %vm3079_vm0, %v3078_v0 }
 0x2ea   : > { %2960 = vmatpush3.bf16.msra.mxu0 %v1495_v6 }
 0x2eb   : > { %2971 = vmatprep.subr.bf16.mxu0 %v3078_v0 }
 0x2ed   : > { %2962 = vmatmul.mubr.msk.bf16.vlgmr.msra.gmra.mrb[40].mxu0 %vm355_vm1, %v3199_v27 }
 0x2ee   : > { %2973 = vmatprep.mubr.msk.bf16.mxu0 %vm3079_vm0, %v3078_v0 }
 0x2f2   : > { %v2928_v19 = vpop.f32.mrb[26].mxu1 }
 0x2f3   : > { %v1462_v34 = vpop.f32.mrb[27].mxu1 }
 0x2f4   : > { %v1496_v37 = vpack.c.bf16 %v2928_v19, %v1462_v34 }
 0x2f6   : > { %2966 = vmatpush3.bf16.msra.mxu1 %v1496_v37 }
 0x2f7   : > { %2977 = vmatprep.subr.bf16.mxu1 %v3078_v0 }
 0x2f9   : > { %2968 = vmatmul.mubr.msk.bf16.vlgmr.msra.gmra.mrb[40].mxu1 %vm355_vm1, %v3203_v28 }
 0x2fa   : > { %2979 = vmatprep.mubr.msk.bf16.mxu1 %vm3079_vm0, %v3078_v0 }
 0x300   : > { %v2931_v20 = vpop.f32.mrb[28].mxu1 }
 0x301   : > { %v1472_v39 = vpop.f32.mrb[29].mxu1 }
 0x302   : > { %v1497_v40 = vpack.c.bf16 %v2931_v20, %v1472_v39  ;;  %v3606_v20 = vld [vmem:[%s3989_s6 + $0x2] sm:$0x1] }
 0x304   : > { %2972 = vmatpush3.bf16.msra.mxu0 %v1497_v40 }
 0x307   : > { %2974 = vmatmul.mubr.msk.bf16.vlgmr.msra.gmra.mrb[44].mxu0 %vm355_vm1, %v3214_v31 }
 0x308   : > { %2995 = vmatprep.mubr.msk.f32.mxu0 %vm3079_vm0, %v3078_v0  ;;  %v2934_v27 = vpop.f32.mrb[30].mxu1 }
 0x309   : > { %v1482_v58 = vpop.f32.mrb[31].mxu1 }
 0x30a   : > { %v1498_v35 = vpack.c.bf16 %v2934_v27, %v1482_v58 }
 0x30c   : > { %2978 = vmatpush3.bf16.msra.mxu1 %v1498_v35 }
 0x30f   : > { %2980 = vmatmul.mubr.msk.bf16.vlgmr.msra.gmra.mrb[44].mxu1 %vm355_vm1, %v3217_v32 }
 0x3ad   : > { %v1533_v28 = vpop.f32.mrb[32].mxu0 }
 0x3ae   : > { %vm1827_vm7 = vcmp.gt.f32.partialorder %v1533_v28, 0.0  ;;  %v1843_v42 = vmul.f32 0.01, %v1533_v28  ;;  %v2939_v44 = vpop.f32.mrb[33].mxu0 }
 0x3af   : > { %v1536_v21 = vpop.f32.mrb[34].mxu0 }
 0x3b0   : > { %v3571_v48 = vsel %vm1827_vm7, %v1533_v28, %v1843_v42  ;;  %vm1828_vm8 = vcmp.gt.f32.partialorder %v1536_v21, 0.0  ;;  %v1844_v62 = vmul.f32 0.01, %v1536_v21  ;;  %v2940_v31 = vpop.f32.mrb[35].mxu0 }
 0x3b1   : > { %v1878_v0 = vsel %vm355_vm1, %v3571_v48, 0.0  ;;  %v1574_v9 = vpop.f32.mrb[32].mxu1 }
 0x3b2   : > { %v3575_v51 = vsel %vm1828_vm8, %v1536_v21, %v1844_v62  ;;  %vm1829_vm0 = vcmp.gt.f32.partialorder %v1574_v9, 0.0  ;;  %v1845_v45 = vmul.f32 0.01, %v1574_v9  ;;  %v2945_v46 = vpop.f32.mrb[33].mxu1 }
 0x3b3   : > { %v1879_v32 = vsel %vm355_vm1, %v3575_v51, 0.0  ;;  %v1577_v1 = vpop.f32.mrb[34].mxu1 }
 0x3b4   : > { %v1880_v53 = vadd.f32 %v1879_v32, %v1878_v0  ;;  %v3579_v43 = vsel %vm1829_vm0, %v1574_v9, %v1845_v45  ;;  %vm1830_vm9 = vcmp.gt.f32.partialorder %v1577_v1, 0.0  ;;  %v1846_v41 = vmul.f32 0.01, %v1577_v1  ;;  %v2946_v56 = vpop.f32.mrb[35].mxu1 }
 0x3b5   : > { %v1887_v57 = vsel %vm355_vm1, %v3579_v43, 0.0  ;;  %vm2414_vm0 = vcmask 1041409  }
 0x3b6   : > { %v1615_v38 = vpop.f32.mrb[36].mxu0  ;;  %v1881_v54 = vrot.slane %v1880_v53, 4  ;;  %v3581_v50 = vsel %vm1830_vm9, %v1577_v1, %v1846_v41  ;;  %vm2416_vm9 = vcmask 1042434  }
 0x3b7   : > { %vm1831_vm10 = vcmp.gt.f32.partialorder %v1615_v38, 0.0  ;;  %v1847_v49 = vmul.f32 0.01, %v1615_v38  ;;  %v2951_v8 = vpop.f32.mrb[37].mxu0  ;;  %v1888_v63 = vsel %vm355_vm1, %v3581_v50, 0.0 }
 0x3b8   : > { %v1618_v16 = vpop.f32.mrb[38].mxu0  ;;  %v1882_v2 = vadd.f32 %v1881_v54, %v1880_v53  ;;  %v1889_v14 = vadd.f32 %v1888_v63, %v1887_v57 }
 0x3b9   : > { %v3587_v59 = vsel %vm1831_vm10, %v1615_v38, %v1847_v49  ;;  %vm1832_vm11 = vcmp.gt.f32.partialorder %v1618_v16, 0.0  ;;  %v2952_v3 = vpop.f32.mrb[39].mxu0  ;;  %v1848_v4 = vmul.f32 0.01, %v1618_v16  ;;  %vm2418_vm10 = vcmask 1043459  }
 0x3ba   : > { %v1883_v36 = vrot.slane %v1882_v2, 2  ;;  %v1890_v11 = vrot.slane %v1889_v14, 4  ;;  %v1896_v12 = vsel %vm355_vm1, %v3587_v59, 0.0 }
 0x3bb   : > { %v1656_v52 = vpop.f32.mrb[36].mxu1  ;;  %v3591_v5 = vsel %vm1832_vm11, %v1618_v16, %v1848_v4  ;;  %vm2420_vm11 = vcmask 1044484  }
 0x3bc   : > { %vm1833_vm12 = vcmp.gt.f32.partialorder %v1656_v52, 0.0  ;;  %v1849_v13 = vmul.f32 0.01, %v1656_v52  ;;  %v2957_v10 = vpop.f32.mrb[37].mxu1  ;;  %v1884_v15 = vadd.f32 %v1883_v36, %v1882_v2  ;;  %v1891_v17 = vadd.f32 %v1890_v11, %v1889_v14 }
 0x3bd   : > { %v1897_v18 = vsel %vm355_vm1, %v3591_v5, 0.0  ;;  %v1659_v60 = vpop.f32.mrb[38].mxu1 }
 0x3be   : > { %v1898_v22 = vadd.f32 %v1897_v18, %v1896_v12  ;;  %v3595_v55 = vsel %vm1833_vm12, %v1656_v52, %v1849_v13  ;;  %vm1834_vm13 = vcmp.gt.f32.partialorder %v1659_v60, 0.0  ;;  %v1850_v23 = vmul.f32 0.01, %v1659_v60  ;;  %v2958_v24 = vpop.f32.mrb[39].mxu1 }
 0x3bf   : > { %v1885_v30 = vrot.slane %v1884_v15, 1  ;;  %v1892_v29 = vrot.slane %v1891_v17, 2  ;;  %v1905_v33 = vsel %vm355_vm1, %v3595_v55, 0.0  ;;  %vm2422_vm12 = vcmask 1045509  }
 0x3c0   : > { %v1899_v7 = vrot.slane %v1898_v22, 4  ;;  %v3599_v26 = vsel %vm1834_vm13, %v1659_v60, %v1850_v23  ;;  %v1697_v25 = vpop.f32.mrb[40].mxu0  ;;  %vm2424_vm13 = vcmask 1046534  }
 0x3c1   : > { %v1886_v6 = vadd.f32 %v1885_v30, %v1884_v15  ;;  %v1893_v19 = vadd.f32 %v1892_v29, %v1891_v17  ;;  %v1906_v34 = vsel %vm355_vm1, %v3599_v26, 0.0  ;;  %vm1835_vm14 = vcmp.gt.f32.partialorder %v1697_v25, 0.0  ;;  %v2963_v37 = vpop.f32.mrb[41].mxu0 }
 0x3c2   : > { %v1900_v39 = vadd.f32 %v1899_v7, %v1898_v22  ;;  %v1907_v40 = vadd.f32 %v1906_v34, %v1905_v33  ;;  %v1851_v27 = vmul.f32 0.01, %v1697_v25  ;;  %v1700_v58 = vpop.f32.mrb[42].mxu0 }
 0x3c3   : > { %v1950_v35 = vmul.f32 0.0625, %v1886_v6  ;;  %v1894_v28 = vrot.slane %v1893_v19, 1  ;;  %vm1836_vm15 = vcmp.gt.f32.partialorder %v1700_v58, 0.0  ;;  %v1852_v42 = vmul.f32 0.01, %v1700_v58  ;;  %v2964_v44 = vpop.f32.mrb[43].mxu0 }
 0x3c4   : > { %v1901_v21 = vrot.slane %v1900_v39, 2  ;;  %v1908_v62 = vrot.slane %v1907_v40, 4  ;;  %v3608_v31 = vsel %vm1835_vm14, %v1697_v25, %v1851_v27  ;;  %vm2426_vm14 = vcmask 1047559  }
 0x3c5   : > { %v1958_v0 = vmul.f32 %v1950_v35, %v3606_v20  ;;  %v1895_v9 = vadd.f32 %v1894_v28, %v1893_v19  ;;  %v1914_v45 = vsel %vm355_vm1, %v3608_v31, 0.0  ;;  %v3613_v46 = vsel %vm1836_vm15, %v1700_v58, %v1852_v42 }
 0x3c6   : > { %v1902_v32 = vadd.f32 %v1901_v21, %v1900_v39  ;;  %v1909_v1 = vadd.f32 %v1908_v62, %v1907_v40  ;;  %v1915_v53 = vsel %vm355_vm1, %v3613_v46, 0.0  ;;  %vm2473_vm15 = vcmask 392192  }
 0x3c7   : > { %v1969_v41 = vrot.slane %v1958_v0, %v3289_v61  ;;  %v1951_v56 = vmul.f32 0.0625, %v1895_v9  ;;  %v1916_v38 = vadd.f32 %v1915_v53, %v1914_v45 }
 0x3c8   : > { %v1903_v54 = vrot.slane %v1902_v32, 1  ;;  %v1910_v49 = vrot.slane %v1909_v1, 2 }
 0x3c9   : > { %v1998_v8 = vsub.f32 %v3571_v48, %v1969_v41  ;;  %v3620_v57 = vsub.f32 %v3575_v51, %v1969_v41  ;;  %v1959_v63 = vmul.f32 %v1951_v56, %v3606_v20  ;;  %v1917_v16 = vrot.slane %v1916_v38, 4 }
 0x3ca   : > { %v1904_v2 = vadd.f32 %v1903_v54, %v1902_v32  ;;  %v1911_v14 = vadd.f32 %v1910_v49, %v1909_v1 }
 0x3cb   : > { %v2014_v3 = vmul.f32 %v1998_v8, %v1998_v8  ;;  %v2015_v4 = vmul.f32 %v3620_v57, %v3620_v57  ;;  %v1973_v36 = vrot.slane %v1959_v63, %v3289_v61  ;;  %v1918_v52 = vadd.f32 %v1917_v16, %v1916_v38 }
 0x3cc   : > { %v1952_v11 = vmul.f32 0.0625, %v1904_v2  ;;  %v1912_v12 = vrot.slane %v1911_v14, 1  ;;  %v1738_v51 = vpop.f32.mrb[40].mxu1 }
 0x3cd   : > { %v2030_v13 = vsel %vm355_vm1, %v2014_v3, 0.0  ;;  %v2031_v48 = vsel %vm355_vm1, %v2015_v4, 0.0  ;;  %v3629_v15 = vsub.f32 %v3579_v43, %v1973_v36  ;;  %v3632_v17 = vsub.f32 %v3581_v50, %v1973_v36  ;;  %v2969_v60 = vpop.f32.mrb[41].mxu1 }
 0x3ce   : > { %v2032_v10 = vadd.f32 %v2031_v48, %v2030_v13  ;;  %v1960_v18 = vmul.f32 %v1952_v11, %v3606_v20  ;;  %v1913_v22 = vadd.f32 %v1912_v12, %v1911_v14  ;;  %v1919_v23 = vrot.slane %v1918_v52, 2  ;;  %v1741_v24 = vpop.f32.mrb[42].mxu1 }
 0x3cf   : > { %v2016_v29 = vmul.f32 %v3629_v15, %v3629_v15  ;;  %v2017_v7 = vmul.f32 %v3632_v17, %v3632_v17  ;;  %v2970_v33 = vpop.f32.mrb[43].mxu1  ;;  %v1853_v50 = vmul.f32 0.01, %v1738_v51  ;;  %vm1837_vm2 = vcmp.gt.f32.partialorder %v1738_v51, 0.0 }
 0x3d0   : > { %v2033_v30 = vrot.slane %v2032_v10, 4  ;;  %v1977_v43 = vrot.slane %v1960_v18, %v3289_v61  ;;  %v1953_v25 = vmul.f32 0.0625, %v1913_v22  ;;  %v1920_v6 = vadd.f32 %v1919_v23, %v1918_v52 }
 0x3d1   : > { %v2039_v34 = vsel %vm355_vm1, %v2016_v29, 0.0  ;;  %v2040_v37 = vsel %vm355_vm1, %v2017_v7, 0.0  ;;  %v3653_v62 = vsel %vm1837_vm2, %v1738_v51, %v1853_v50  ;;  %vm1838_vm3 = vcmp.gt.f32.partialorder %v1741_v24, 0.0 }
 0x3d2   : > { %v2034_v19 = vadd.f32 %v2033_v30, %v2032_v10  ;;  %v2041_v39 = vadd.f32 %v2040_v37, %v2039_v34  ;;  %v3643_v40 = vsub.f32 %v3587_v59, %v1977_v43  ;;  %v3646_v27 = vsub.f32 %v3591_v5, %v1977_v43  ;;  %v3658_v59 = vld [vmem:[%s3989_s6] ss:$0 sm:$0xff] }
 0x3d3   : > { %v1961_v58 = vmul.f32 %v1953_v25, %v3606_v20  ;;  %v1921_v28 = vrot.slane %v1920_v6, 1  ;;  %v1854_v53 = vmul.f32 0.01, %v1741_v24  ;;  %v3670_v49 = vmul.f32 %v3658_v59, %v1998_v8 }
 0x3d4   : > { %v2035_v35 = vrot.slane %v2034_v19, 2  ;;  %v2042_v42 = vrot.slane %v2041_v39, 4  ;;  %v2018_v44 = vmul.f32 %v3643_v40, %v3643_v40  ;;  %v2019_v21 = vmul.f32 %v3646_v27, %v3646_v27 }
 0x3d5   : > { %v1981_v0 = vrot.slane %v1961_v58, %v3289_v61  ;;  %v1922_v9 = vadd.f32 %v1921_v28, %v1920_v6  ;;  %v3672_v2 = vsel %vm1838_vm3, %v1741_v24, %v1854_v53  ;;  %v1923_v12 = vsel %vm355_vm1, %v3653_v62, 0.0 }
 0x3d6   : > { %v2036_v5 = vadd.f32 %v2035_v35, %v2034_v19  ;;  %v2043_v45 = vadd.f32 %v2042_v42, %v2041_v39  ;;  %v2048_v32 = vsel %vm355_vm1, %v2018_v44, 0.0  ;;  %v2049_v1 = vsel %vm355_vm1, %v2019_v21, 0.0 }
 0x3d7   : > { %v2050_v56 = vadd.f32 %v2049_v1, %v2048_v32  ;;  %v3664_v38 = vsub.f32 %v3595_v55, %v1981_v0  ;;  %v3667_v54 = vsub.f32 %v3599_v26, %v1981_v0  ;;  %v1954_v16 = vmul.f32 0.0625, %v1922_v9 }
 0x3d8   : > { %v2037_v41 = vrot.slane %v2036_v5, 1  ;;  %v2044_v63 = vrot.slane %v2043_v45, 2  ;;  %v3680_v26 = vmul.f32 %v3658_v59, %v3620_v57  ;;  %v1924_v57 = vsel %vm355_vm1, %v3672_v2, 0.0 }
 0x3d9   : > { %v2051_v3 = vrot.slane %v2050_v56, 4  ;;  %v2020_v4 = vmul.f32 %v3664_v38, %v3664_v38  ;;  %v2021_v36 = vmul.f32 %v3667_v54, %v3667_v54  ;;  %v1962_v8 = vmul.f32 %v1954_v16, %v3606_v20 }
 0x3da   : > { %v2038_v14 = vadd.f32 %v2037_v41, %v2036_v5  ;;  %v1779_v55 = vpop.f32.mrb[44].mxu0  ;;  %v2045_v11 = vadd.f32 %v2044_v63, %v2043_v45  ;;  %v1925_v7 = vadd.f32 %v1924_v57, %v1923_v12  ;;  %v3694_v28 = vmul.f32 %v3658_v59, %v3629_v15 }
 0x3db   : > { %v2975_v52 = vpop.f32.mrb[45].mxu0  ;;  %v2052_v48 = vadd.f32 %v2051_v3, %v2050_v56  ;;  %v2057_v51 = vsel %vm355_vm1, %v2020_v4, 0.0  ;;  %v2058_v10 = vsel %vm355_vm1, %v2021_v36, 0.0  ;;  %v1985_v23 = vrot.slane %v1962_v8, %v3289_v61 }
 0x3dc   : > { %v2102_v13 = vmul.f32 0.0625, %v2038_v14  ;;  %v1782_v18 = vpop.f32.mrb[46].mxu0  ;;  %v2046_v60 = vrot.slane %v2045_v11, 1  ;;  %v2059_v22 = vadd.f32 %v2058_v10, %v2057_v51  ;;  %vm1839_vm5 = vcmp.gt.f32.partialorder %v1779_v55, 0.0 }
 0x3dd   : > { %v2976_v24 = vpop.f32.mrb[47].mxu0  ;;  %v2053_v29 = vrot.slane %v2052_v48, 2  ;;  %v2006_v25 = vsub.f32 %v3608_v31, %v1985_v23  ;;  %v2007_v6 = vsub.f32 %v3613_v46, %v1985_v23  ;;  %v1926_v19 = vrot.slane %v1925_v7, 4 }
 0x3de   : > { %v2130_v30 = vadd.f32 1e-05, %v2102_v13  ;;  %v2047_v33 = vadd.f32 %v2046_v60, %v2045_v11  ;;  %v2060_v43 = vrot.slane %v2059_v22, 4  ;;  %v1855_v34 = vmul.f32 0.01, %v1779_v55 }
 0x3df   : > { %v2054_v50 = vadd.f32 %v2053_v29, %v2052_v48  ;;  %v2022_v58 = vmul.f32 %v2006_v25, %v2006_v25  ;;  %v2023_v35 = vmul.f32 %v2007_v6, %v2007_v6  ;;  %v3698_v42 = vmul.f32 %v3658_v59, %v3632_v17  ;;  %v3732_v60 = vld [vmem:[%s3989_s6 + $0x1] ss:$0 sm:$0xff] }
 0x3e0   : > { %3053 = vrsqrt.f32 %v2130_v30  ;;  %v2103_v37 = vmul.f32 0.0625, %v2047_v33  ;;  %v2061_v39 = vadd.f32 %v2060_v43, %v2059_v22  ;;  %v1927_v31 = vadd.f32 %v1926_v19, %v1925_v7 }
 0x3e1   : > { %v2055_v44 = vrot.slane %v2054_v50, 1  ;;  %v2066_v5 = vsel %vm355_vm1, %v2022_v58, 0.0  ;;  %v2067_v0 = vsel %vm355_vm1, %v2023_v35, 0.0  ;;  %v3703_v1 = vsel %vm1839_vm5, %v1779_v55, %v1855_v34 }
 0x3e2   : > { %v2131_v21 = vadd.f32 1e-05, %v2103_v37  ;;  %v2062_v46 = vrot.slane %v2061_v39, 2  ;;  %v2068_v45 = vadd.f32 %v2067_v0, %v2066_v5  ;;  %v1928_v32 = vrot.slane %v1927_v31, 2  ;;  %v1820_v53 = vpop.f32.mrb[44].mxu1 }
 0x3e3   : > { %v2056_v9 = vadd.f32 %v2055_v44, %v2054_v50  ;;  %v3707_v15 = vmul.f32 %v3658_v59, %v3643_v40  ;;  %vm1840_vm6 = vcmp.gt.f32.partialorder %v1782_v18, 0.0  ;;  %v1856_v16 = vmul.f32 0.01, %v1782_v18  ;;  %v2981_v14 = vpop.f32.mrb[45].mxu1 }
 0x3e4   : > { %3055 = vrsqrt.f32 %v2131_v21  ;;  %v2063_v17 = vadd.f32 %v2062_v46, %v2061_v39  ;;  %v2069_v56 = vrot.slane %v2068_v45, 4  ;;  %v1929_v63 = vadd.f32 %v1928_v32, %v1927_v31  ;;  %v3719_v55 = vpop.f32.mrb[46].mxu1 }
 0x3e5   : > { %v2104_v41 = vmul.f32 0.0625, %v2056_v9  ;;  %v3711_v3 = vmul.f32 %v3658_v59, %v3646_v27  ;;  %v3715_v36 = vmul.f32 %v3658_v59, %v3664_v38  ;;  %v1932_v40 = vsel %vm355_vm1, %v3703_v1, 0.0  ;;  %v2982_v13 = vpop.f32.mrb[47].mxu1 }
 0x3e6   : > { %v2064_v4 = vrot.slane %v2063_v17, 1  ;;  %v2070_v8 = vadd.f32 %v2069_v56, %v2068_v45  ;;  %v1930_v12 = vrot.slane %v1929_v63, 1  ;;  %v3721_v52 = vsel %vm1840_vm6, %v1782_v18, %v1856_v16 }
 0x3e7   : > { %v2132_v11 = vadd.f32 1e-05, %v2104_v41  ;;  %v3725_v27 = vmul.f32 %v3658_v59, %v3667_v54  ;;  %v1933_v38 = vsel %vm355_vm1, %v3721_v52, 0.0  ;;  %v1857_v51 = vmul.f32 0.01, %v1820_v53 }
 0x3e8   : > { %v2065_v48 = vadd.f32 %v2064_v4, %v2063_v17  ;;  %v2071_v22 = vrot.slane %v2070_v8, 2  ;;  %v1931_v23 = vadd.f32 %v1930_v12, %v1929_v63  ;;  %v1934_v18 = vadd.f32 %v1933_v38, %v1932_v40 }
 0x3e9   : > { %vm1841_vm7 = vcmp.gt.f32.partialorder %v1820_v53, 0.0  ;;  %v3737_v30 = vmul.f32 %v3658_v59, %v2006_v25  ;;  %3057 = vrsqrt.f32 %v2132_v11  ;;  %v3740_v7 = vmul.f32 %v3658_v59, %v2007_v6 }
 0x3ea   : > { %v3054_v10 = vpop.eup %3053  ;;  %v2105_v54 = vmul.f32 0.0625, %v2065_v48  ;;  %v2072_v29 = vadd.f32 %v2071_v22, %v2070_v8  ;;  %v1955_v33 = vmul.f32 0.0625, %v1931_v23  ;;  %v3744_v34 = vsel %vm1841_vm7, %v1820_v53, %v1857_v51 }
 0x3eb   : > { %v2146_v57 = vmul.f32 %v3054_v10, %v3670_v49  ;;  %v2147_v24 = vmul.f32 %v3054_v10, %v3680_v26  ;;  %v1935_v37 = vrot.slane %v1934_v18, 4  ;;  %vm1842_vm8 = vcmp.gt.f32.partialorder %v3719_v55, 0.0 }
 0x3ec   : > { %v2133_v19 = vadd.f32 1e-05, %v2105_v54  ;;  %v2073_v49 = vrot.slane %v2072_v29, 1  ;;  %v1963_v26 = vmul.f32 %v1955_v33, %v3606_v20  ;;  %v3759_v53 = vsel %vm355_vm1, %v3744_v34, 0.0 }
 0x3ed   : > { %v2166_v43 = vadd.f32 %v3732_v60, %v2146_v57  ;;  %v2167_v50 = vadd.f32 %v3732_v60, %v2147_v24  ;;  %v1858_v16 = vmul.f32 0.01, %v3719_v55  ;;  %v3767_v4 = vadd.f32 %v1935_v37, %v1934_v18 }
 0x3ee   : > { %v3056_v25 = vpop.eup %3055  ;;  %3059 = vrsqrt.f32 %v2133_v19  ;;  %v1989_v17 = vrot.slane %v1963_v26, %v3289_v61  ;;  %v2074_v12 = vadd.f32 %v2073_v49, %v2072_v29  ;;  %vm2605_vm2 = vcmask 24576  }
 0x3ef   : > { %v2182_v39 = vsel %vm355_vm1, %v2166_v43, 0.0  ;;  %v2183_v6 = vsel %vm355_vm1, %v2167_v50, 0.0  ;;  %v2262_v58 = vsel %vm355_vm1, %v2166_v43, -inf  ;;  %v2263_v35 = vsel %vm355_vm1, %v2167_v50, -inf }
 0x3f0   : > { %v2184_v44 = vadd.f32 %v2183_v6, %v2182_v39  ;;  %v2264_v31 = vmax.f32 %v2262_v58, %v2263_v35  ;;  %v2334_v21 = vsel %vm355_vm1, %v2166_v43, inf  ;;  %v2335_v46 = vsel %vm355_vm1, %v2167_v50, inf }
 0x3f1   : > { %v2336_v5 = vmin.f32 %v2334_v21, %v2335_v46  ;;  %v2148_v0 = vmul.f32 %v3056_v25, %v3694_v28  ;;  %v2149_v9 = vmul.f32 %v3056_v25, %v3698_v42  ;;  %v3765_v42 = vsub.f32 %v3653_v62, %v1989_v17 }
 0x3f2   : > { %v2185_v45 = vrot.slane %v2184_v44, 4  ;;  %v2265_v32 = vrot.slane %v2264_v31, 4  ;;  %v3778_v18 = vsel %vm1842_vm8, %v3719_v55, %v1858_v16  ;;  %v2106_v19 = vmul.f32 0.0625, %v2074_v12 }
 0x3f3   : > { %v2337_v41 = vrot.slane %v2336_v5, 4  ;;  %v2168_v56 = vadd.f32 %v3732_v60, %v2148_v0  ;;  %v2169_v63 = vadd.f32 %v3732_v60, %v2149_v9  ;;  %v3058_v13 = vpop.eup %3057  ;;  %v1937_v25 = vrot.slane %v3767_v4, 2 }
 0x3f4   : > { %v2186_v14 = vadd.f32 %v2185_v45, %v2184_v44  ;;  %v2266_v28 = vmax.f32 %v2264_v31, %v2265_v32  ;;  %v2150_v43 = vmul.f32 %v3058_v13, %v3707_v15  ;;  %v2151_v50 = vmul.f32 %v3058_v13, %v3711_v3 }
 0x3f5   : > { %v2191_v40 = vsel %vm355_vm1, %v2168_v56, 0.0  ;;  %v2192_v11 = vsel %vm355_vm1, %v2169_v63, 0.0  ;;  %v2271_v8 = vsel %vm355_vm1, %v2168_v56, -inf  ;;  %v2338_v38 = vmin.f32 %v2336_v5, %v2337_v41 }
 0x3f6   : > { %v2187_v48 = vrot.slane %v2186_v14, 2  ;;  %v2193_v51 = vadd.f32 %v2192_v11, %v2191_v40  ;;  %v2272_v10 = vsel %vm355_vm1, %v2169_v63, -inf  ;;  %v2343_v23 = vsel %vm355_vm1, %v2168_v56, inf }
 0x3f7   : > { %v2273_v22 = vmax.f32 %v2271_v8, %v2272_v10  ;;  %v2344_v62 = vsel %vm355_vm1, %v2169_v63, inf  ;;  %v2267_v24 = vrot.slane %v2266_v28, 2  ;;  %v2339_v49 = vrot.slane %v2338_v38, 2 }
 0x3f8   : > { %v2188_v57 = vadd.f32 %v2187_v48, %v2186_v14  ;;  %v2194_v54 = vrot.slane %v2193_v51, 4  ;;  %v2345_v29 = vmin.f32 %v2343_v23, %v2344_v62  ;;  %v3060_v39 = vpop.eup %3059  ;;  %v2170_v55 = vadd.f32 %v3732_v60, %v2150_v43 }
 0x3f9   : > { %v2274_v33 = vrot.slane %v2273_v22, 4  ;;  %v2171_v58 = vadd.f32 %v3732_v60, %v2151_v50  ;;  %v3786_v35 = vsub.f32 %v3672_v2, %v1989_v17  ;;  %v3788_v44 = vmax.f32 %v2266_v28, %v2267_v24 }
 0x3fa   : > { %v2195_v26 = vadd.f32 %v2194_v54, %v2193_v51  ;;  %v2346_v37 = vrot.slane %v2345_v29, 4  ;;  %v2189_v6 = vrot.slane %v2188_v57, 1  ;;  %v2152_v3 = vmul.f32 %v3060_v39, %v3715_v36 }
 0x3fb   : > { %v2275_v31 = vmax.f32 %v2273_v22, %v2274_v33  ;;  %v2200_v21 = vsel %vm355_vm1, %v2170_v55, 0.0  ;;  %v2201_v46 = vsel %vm355_vm1, %v2171_v58, 0.0  ;;  %v2280_v5 = vsel %vm355_vm1, %v2170_v55, -inf }
 0x3fc   : > { %v2196_v15 = vrot.slane %v2195_v26, 2  ;;  %v2134_v0 = vadd.f32 1e-05, %v2106_v19  ;;  %v3794_v9 = vmin.f32 %v2338_v38, %v2339_v49  ;;  %v2347_v45 = vmin.f32 %v2345_v29, %v2346_v37 }
 0x3fd   : > { %v2202_v32 = vadd.f32 %v2201_v46, %v2200_v21  ;;  %v2281_v2 = vsel %vm355_vm1, %v2171_v58, -inf  ;;  %v3797_v17 = vadd.f32 %v2189_v6, %v2188_v57  ;;  %v2352_v56 = vsel %vm355_vm1, %v2170_v55, inf }
 0x3fe   : > { %v2282_v41 = vmax.f32 %v2280_v5, %v2281_v2  ;;  %v2353_v36 = vsel %vm355_vm1, %v2171_v58, inf  ;;  %v2197_v63 = vadd.f32 %v2196_v15, %v2195_v26  ;;  %v2276_v16 = vrot.slane %v2275_v31, 2 }
 0x3ff   : > { %v2203_v14 = vrot.slane %v2202_v32, 4  ;;  %v2354_v28 = vmin.f32 %v2352_v56, %v2353_v36  ;;  %v2153_v11 = vmul.f32 %v3060_v39, %v3725_v27  ;;  %v2172_v8 = vadd.f32 %v3732_v60, %v2152_v3 }
 0x400   : > { %v2283_v40 = vrot.slane %v2282_v41, 4  ;;  %3061 = vrsqrt.f32 %v2134_v0  ;;  %v2348_v12 = vrot.slane %v2347_v45, 2  ;;  %v2024_v38 = vmul.f32 %v3765_v42, %v3765_v42 }
 0x401   : > { %v2204_v13 = vadd.f32 %v2203_v14, %v2202_v32  ;;  %v2355_v48 = vrot.slane %v2354_v28, 4  ;;  %v2173_v10 = vadd.f32 %v3732_v60, %v2153_v11  ;;  %v2209_v22 = vsel %vm355_vm1, %v2172_v8, 0.0 }
 0x402   : > { %v2284_v51 = vmax.f32 %v2282_v41, %v2283_v40  ;;  %v2289_v23 = vsel %vm355_vm1, %v2172_v8, -inf  ;;  %v2198_v62 = vrot.slane %v2197_v63, 1  ;;  %v2361_v27 = vsel %vm355_vm1, %v2172_v8, inf }
 0x403   : > { %v2205_v57 = vrot.slane %v2204_v13, 2  ;;  %v2025_v24 = vmul.f32 %v3786_v35, %v3786_v35  ;;  %v3811_v54 = vmin.f32 %v2354_v28, %v2355_v48  ;;  %v2210_v29 = vsel %vm355_vm1, %v2173_v10, 0.0 }
 0x404   : > { %v2290_v33 = vsel %vm355_vm1, %v2173_v10, -inf  ;;  %v2362_v43 = vsel %vm355_vm1, %v2173_v10, inf  ;;  %v2277_v50 = vmax.f32 %v2275_v31, %v2276_v16  ;;  %v3816_v19 = vmin.f32 %v2347_v45, %v2348_v12 }
 0x405   : > { %v2211_v49 = vadd.f32 %v2210_v29, %v2209_v22  ;;  %v2291_v26 = vmax.f32 %v2289_v23, %v2290_v33  ;;  %v2285_v37 = vrot.slane %v2284_v51, 2  ;;  %v2363_v39 = vmin.f32 %v2361_v27, %v2362_v43 }
 0x406   : > { %v2075_v6 = vsel %vm355_vm1, %v2024_v38, 0.0  ;;  %v2076_v55 = vsel %vm355_vm1, %v2025_v24, 0.0  ;;  %v3820_v58 = vadd.f32 %v2198_v62, %v2197_v63  ;;  %v3822_v15 = vadd.f32 %v2205_v57, %v2204_v13 }
 0x407   : > { %v2212_v3 = vrot.slane %v2211_v49, 4  ;;  %v2077_v21 = vadd.f32 %v2076_v55, %v2075_v6  ;;  %v2357_v46 = vrot.slane %v3811_v54, 2  ;;  %v3827_v31 = vmul.f32 %v3658_v59, %v3765_v42 }
 0x408   : > { %v1938_v5 = vadd.f32 %v1937_v25, %v3767_v4  ;;  %v1942_v0 = vsel %vm355_vm1, %v3778_v18, 0.0  ;;  %v2292_v45 = vrot.slane %v2291_v26, 4  ;;  %v2269_v41 = vrot.slane %v3788_v44, 1 }
 0x409   : > { %v2078_v32 = vrot.slane %v2077_v21, 4  ;;  %v1943_v2 = vadd.f32 %v1942_v0, %v3759_v53  ;;  %v2364_v36 = vrot.slane %v2363_v39, 4  ;;  %v2278_v16 = vrot.slane %v2277_v50, 1 }
 0x40a   : > { %v3062_v56 = vpop.eup %3061  ;;  %v1939_v63 = vrot.slane %v1938_v5, 1  ;;  %v2286_v14 = vmax.f32 %v2284_v51, %v2285_v37  ;;  %v3834_v28 = vadd.f32 %v2212_v3, %v2211_v49  ;;  %v2270_v8 = vmax.f32 %v3788_v44, %v2269_v41 }
 0x40b   : > { %v2154_v42 = vmul.f32 %v3062_v56, %v3737_v30  ;;  %v2155_v4 = vmul.f32 %v3062_v56, %v3740_v7  ;;  %v2079_v25 = vadd.f32 %v2078_v32, %v2077_v21  ;;  %v1944_v11 = vrot.slane %v1943_v2, 4 }
 0x40c   : > { %v1940_v40 = vadd.f32 %v1939_v63, %v1938_v5  ;;  %v2279_v53 = vmax.f32 %v2277_v50, %v2278_v16  ;;  %v2287_v38 = vrot.slane %v2286_v14, 1  ;;  %v2293_v22 = vmax.f32 %v2291_v26, %v2292_v45 }
 0x40d   : > { %v2174_v12 = vadd.f32 %v3732_v60, %v2154_v42  ;;  %v2175_v13 = vadd.f32 %v3732_v60, %v2155_v4  ;;  %v2080_v48 = vrot.slane %v2079_v25, 2  ;;  %v1945_v51 = vadd.f32 %v1944_v11, %v1943_v2 }
 0x40e   : > { %v1956_v10 = vmul.f32 0.0625, %v1940_v40  ;;  %v2437_v23 = vsel %vm2414_vm0, %v2279_v53, %v2270_v8  ;;  %v2207_v26 = vrot.slane %v3822_v15, 1  ;;  %v2288_v37 = vmax.f32 %v2286_v14, %v2287_v38 }
 0x40f   : > { %v2218_v30 = vsel %vm355_vm1, %v2174_v12, 0.0  ;;  %v2219_v7 = vsel %vm355_vm1, %v2175_v13, 0.0  ;;  %v2298_v62 = vsel %vm355_vm1, %v2174_v12, -inf  ;;  %v2299_v44 = vsel %vm355_vm1, %v2175_v13, -inf }
 0x410   : > { %v3846_v57 = vadd.f32 %v2219_v7, %v2218_v30  ;;  %v2300_v27 = vmax.f32 %v2298_v62, %v2299_v44  ;;  %v2370_v24 = vsel %vm355_vm1, %v2174_v12, inf  ;;  %v2371_v29 = vsel %vm355_vm1, %v2175_v13, inf }
 0x411   : > { %v2372_v33 = vmin.f32 %v2370_v24, %v2371_v29  ;;  %v2081_v43 = vadd.f32 %v2080_v48, %v2079_v25  ;;  %v1964_v50 = vmul.f32 %v1956_v10, %v3606_v20  ;;  %v1946_v49 = vrot.slane %v1945_v51, 2 }
 0x412   : > { %v2294_v6 = vrot.slane %v2293_v22, 2  ;;  %v2301_v55 = vrot.slane %v2300_v27, 4  ;;  %v2365_v3 = vmin.f32 %v2363_v39, %v2364_v36  ;;  %v2214_v45 = vrot.slane %v3834_v28, 2 }
 0x413   : > { %v2082_v21 = vrot.slane %v2081_v43, 1  ;;  %v1993_v5 = vrot.slane %v1964_v50, %v3289_v61  ;;  %v1947_v0 = vadd.f32 %v1946_v49, %v1945_v51  ;;  %v2438_v41 = vsel %vm2416_vm9, %v2288_v37, %v2437_v23  ;;  %v2468_v50 = vld [vmem:[%s3987_s4 + $0x8] sm:$0xff] }
 0x414   : > { %v2295_v32 = vmax.f32 %v2293_v22, %v2294_v6  ;;  %v2302_v2 = vmax.f32 %v2300_v27, %v2301_v55  ;;  %v2221_v39 = vrot.slane %v3846_v57, 4  ;;  %v2341_v4 = vrot.slane %v3794_v9, 1  ;;  %v2469_v55 = vld [vmem:[%s3987_s4 + $0x10] sm:$0xff] }
 0x415   : > { %v2083_v56 = vadd.f32 %v2082_v21, %v2081_v43  ;;  %v3856_v63 = vsub.f32 %v3703_v1, %v1993_v5  ;;  %v3859_v16 = vsub.f32 %v3721_v52, %v1993_v5  ;;  %v1948_v14 = vrot.slane %v1947_v0, 1  ;;  %v2470_v21 = vld [vmem:[%s3987_s4 + $0x18] sm:$0xff] }
 0x416   : > { %v2296_v36 = vrot.slane %v2295_v32, 1  ;;  %v2303_v42 = vrot.slane %v2302_v2, 2  ;;  %v2350_v1 = vrot.slane %v3816_v19, 1  ;;  %v2373_v8 = vrot.slane %v2372_v33, 4 }
 0x417   : > { %v2107_v25 = vmul.f32 0.0625, %v2083_v56  ;;  %v2026_v40 = vmul.f32 %v3856_v63, %v3856_v63  ;;  %v2027_v11 = vmul.f32 %v3859_v16, %v3859_v16  ;;  %v1949_v53 = vadd.f32 %v1948_v14, %v1947_v0 }
 0x418   : > { %v2297_v52 = vmax.f32 %v2295_v32, %v2296_v36  ;;  %v2304_v12 = vmax.f32 %v2302_v2, %v2303_v42  ;;  %v2342_v10 = vmin.f32 %v3794_v9, %v2341_v4  ;;  %v2351_v7 = vmin.f32 %v3816_v19, %v2350_v1  ;;  %v2467_v9 = vld [vmem:[%s3987_s4] sm:$0xff] }
 0x419   : > { %v2135_v13 = vadd.f32 1e-05, %v2107_v25  ;;  %v2084_v48 = vsel %vm355_vm1, %v2026_v40, 0.0  ;;  %v2085_v38 = vsel %vm355_vm1, %v2027_v11, 0.0  ;;  %v1957_v22 = vmul.f32 0.0625, %v1949_v53 }
 0x41a   : > { %v2086_v51 = vadd.f32 %v2085_v38, %v2084_v48  ;;  %v2305_v23 = vrot.slane %v2304_v12, 1  ;;  %v2439_v30 = vsel %vm2418_vm10, %v2297_v52, %v2438_v41  ;;  %v2358_v62 = vmin.f32 %v3811_v54, %v2357_v46 }
 0x41b   : > { %3063 = vrsqrt.f32 %v2135_v13  ;;  %v2366_v44 = vrot.slane %v2365_v3, 2  ;;  %v1965_v24 = vmul.f32 %v1957_v22, %v3606_v20  ;;  %v2374_v43 = vmin.f32 %v2372_v33, %v2373_v8 }
 0x41c   : > { %v2087_v27 = vrot.slane %v2086_v51, 4  ;;  %v2306_v29 = vmax.f32 %v2304_v12, %v2305_v23  ;;  %v2359_v49 = vrot.slane %v2358_v62, 1  ;;  %v2455_v37 = vsel %vm2414_vm0, %v2351_v7, %v2342_v10 }
 0x41d   : > { %v2367_v19 = vmin.f32 %v2365_v3, %v2366_v44  ;;  %v1997_v54 = vrot.slane %v1965_v24, %v3289_v61  ;;  %v2375_v20 = vrot.slane %v2374_v43, 2  ;;  %v3080_v33 = vmov 0.0|0.0  }
 0x41e   : > { %v2088_v6 = vadd.f32 %v2087_v27, %v2086_v51  ;;  %v3886_v46 = vsel %vm2420_vm11, %v2306_v29, %v2439_v30  ;;  %3006 = vmatprep.subr.bf16.mxu0 %v3080_v33  ;;  %v2222_v3 = vadd.f32 %v2221_v39, %v3846_v57  ;;  %v2360_v5 = vmin.f32 %v2358_v62, %v2359_v49 }
 0x41f   : > { %v2368_v0 = vrot.slane %v2367_v19, 1  ;;  %v3007_v32 = vpack.c.bf16 %v2468_v50, %v2467_v9  ;;  %v3896_v2 = vsub.f32 %v3744_v34, %v1997_v54  ;;  %v3899_v41 = vsub.f32 %v3778_v18, %v1997_v54 }
 0x420   : > { %v2089_v61 = vrot.slane %v2088_v6, 2  ;;  %v2376_v56 = vmin.f32 %v2374_v43, %v2375_v20  ;;  %v2456_v36 = vsel %vm2416_vm9, %v2360_v5, %v2455_v37  ;;  %v3010_v42 = vpack.c.bf16 %v2470_v21, %v2469_v55 }
 0x421   : > { %v2369_v14 = vmin.f32 %v2367_v19, %v2368_v0  ;;  %3008 = vmatpush3.bf16.msra.mxu0 %v3007_v32  ;;  %v2215_v4 = vadd.f32 %v2214_v45, %v3834_v28  ;;  %v2125_v57 = vmul.f32 %v3658_v59, %v3786_v35  ;;  %v2028_v25 = vmul.f32 %v3896_v2, %v3896_v2 }
 0x422   : > { %v2090_v39 = vadd.f32 %v2089_v61, %v2088_v6  ;;  %v2029_v34 = vmul.f32 %v3899_v41, %v3899_v41  ;;  %3009 = vmatprep.subr.bf16.mxu0 %v3080_v33  ;;  %v2377_v18 = vrot.slane %v2376_v56, 1  ;;  %v2208_v11 = vadd.f32 %v2207_v26, %v3822_v15 }
 0x423   : > { %v2457_v40 = vsel %vm2418_vm10, %v2369_v14, %v2456_v36  ;;  %v2216_v1 = vrot.slane %v2215_v4, 1  ;;  %v2093_v45 = vsel %vm355_vm1, %v2028_v25, 0.0  ;;  %v2223_v8 = vrot.slane %v2222_v3, 2 }
 0x424   : > { %v2091_v28 = vrot.slane %v2090_v39, 1  ;;  %v2094_v35 = vsel %vm355_vm1, %v2029_v34, 0.0  ;;  %v2378_v12 = vmin.f32 %v2376_v56, %v2377_v18  ;;  %v2254_v48 = vmul.f32 0.0625, %v3797_v17 }
 0x425   : > { %v3064_v53 = vpop.eup %3063  ;;  %v2095_v52 = vadd.f32 %v2094_v35, %v2093_v45  ;;  %3011 = vmatpush3.bf16.msra.mxu0 %v3010_v42  ;;  %v2217_v13 = vadd.f32 %v2216_v1, %v2215_v4  ;;  %v2224_v22 = vadd.f32 %v2223_v8, %v2222_v3  ;;  %v2255_v23 = vmul.f32 0.0625, %v3820_v58 }
 0x426   : > { %v2156_v38 = vmul.f32 %v3064_v53, %v3827_v31  ;;  %v2157_v10 = vmul.f32 %v3064_v53, %v2125_v57  ;;  %v2092_v51 = vadd.f32 %v2091_v28, %v2090_v39  ;;  %3012 = vmatprep.subr.bf16.mxu0 %v3080_v33  ;;  %v2458_v26 = vsel %vm2420_vm11, %v2378_v12, %v2457_v40 }
 0x427   : > { %v2096_v15 = vrot.slane %v2095_v52, 4  ;;  %v2256_v30 = vmul.f32 0.0625, %v2208_v11  ;;  %v2225_v27 = vrot.slane %v2224_v22, 1  ;;  %v2257_v17 = vmul.f32 0.0625, %v2217_v13 }
 0x428   : > { %v2176_v7 = vadd.f32 %v3732_v60, %v2156_v38  ;;  %v2177_v62 = vadd.f32 %v3732_v60, %v2157_v10  ;;  %v2108_v44 = vmul.f32 0.0625, %v2092_v51  ;;  %v2415_v31 = vsel %vm2414_vm0, %v2255_v23, %v2254_v48 }
 0x429   : > { %v2097_v24 = vadd.f32 %v2096_v15, %v2095_v52  ;;  %v2226_v20 = vadd.f32 %v2225_v27, %v2224_v22  ;;  %v2417_v33 = vsel %vm2416_vm9, %v2256_v30, %v2415_v31  ;;  %v2126_v35 = vmul.f32 %v3658_v59, %v3856_v63 }
 0x42a   : > { %v2227_v29 = vsel %vm355_vm1, %v2176_v7, 0.0  ;;  %v2228_v43 = vsel %vm355_vm1, %v2177_v62, 0.0  ;;  %v2308_v9 = vsel %vm355_vm1, %v2177_v62, -inf  ;;  %v2379_v50 = vsel %vm355_vm1, %v2176_v7, inf }
 0x42b   : > { %v2229_v58 = vadd.f32 %v2228_v43, %v2227_v29  ;;  %v2380_v49 = vsel %vm355_vm1, %v2177_v62, inf  ;;  %v2136_v19 = vadd.f32 1e-05, %v2108_v44  ;;  %v2098_v37 = vrot.slane %v2097_v24, 2 }
 0x42c   : > { %v2381_v6 = vmin.f32 %v2379_v50, %v2380_v49  ;;  %v2307_v54 = vsel %vm355_vm1, %v2176_v7, -inf  ;;  %v2258_v0 = vmul.f32 0.0625, %v2226_v20  ;;  %v2419_v32 = vsel %vm2418_vm10, %v2257_v17, %v2417_v33 }
 0x42d   : > { %v2230_v55 = vrot.slane %v2229_v58, 4  ;;  %3065 = vrsqrt.f32 %v2136_v19  ;;  %v2099_v21 = vadd.f32 %v2098_v37, %v2097_v24  ;;  %v2309_v3 = vmax.f32 %v2307_v54, %v2308_v9 }
 0x42e   : > { %v2382_v5 = vrot.slane %v2381_v6, 4  ;;  %v2421_v42 = vsel %vm2420_vm11, %v2258_v0, %v2419_v32  ;;  %v2127_v8 = vmul.f32 %v3658_v59, %v3859_v16 }
 0x42f   : > { %v2100_v61 = vrot.slane %v2099_v21, 1  ;;  %v2310_v56 = vrot.slane %v2309_v3, 4  ;;  %v2231_v14 = vadd.f32 %v2230_v55, %v2229_v58 }
 0x430   : > { %v2383_v36 = vmin.f32 %v2381_v6, %v2382_v5 }
 0x431   : > { %v2101_v4 = vadd.f32 %v2100_v61, %v2099_v21  ;;  %v2311_v57 = vmax.f32 %v2309_v3, %v2310_v56  ;;  %v2232_v39 = vrot.slane %v2231_v14, 2 }
 0x432   : > { %v2384_v25 = vrot.slane %v2383_v36, 2 }
 0x433   : > { %v2109_v34 = vmul.f32 0.0625, %v2101_v4  ;;  %v2312_v18 = vrot.slane %v2311_v57, 2  ;;  %v2233_v40 = vadd.f32 %v2232_v39, %v2231_v14 }
 0x434   : > { %v2385_v11 = vmin.f32 %v2383_v36, %v2384_v25 }
 0x435   : > { %v2137_v1 = vadd.f32 1e-05, %v2109_v34  ;;  %v2313_v28 = vmax.f32 %v2311_v57, %v2312_v18  ;;  %v2234_v45 = vrot.slane %v2233_v40, 1  ;;  %v2471_v18 = vld [vmem:[%s3987_s4 + $0x20] sm:$0xff] }
 0x436   : > { %v2386_v53 = vrot.slane %v2385_v11, 1 }
 0x437   : > { %v3066_v52 = vpop.eup %3065  ;;  %3067 = vrsqrt.f32 %v2137_v1  ;;  %v2314_v12 = vrot.slane %v2313_v28, 1  ;;  %v2235_v13 = vadd.f32 %v2234_v45, %v2233_v40  ;;  %v2472_v40 = vld [vmem:[%s3987_s4 + $0x28] sm:$0xff] }
 0x438   : > { %v2158_v48 = vmul.f32 %v3066_v52, %v2126_v35  ;;  %v2159_v38 = vmul.f32 %v3066_v52, %v2127_v8  ;;  %v2387_v10 = vmin.f32 %v2385_v11, %v2386_v53  ;;  %v3013_v45 = vpack.c.bf16 %v2472_v40, %v2471_v18 }
 0x439   : > { %v2315_v51 = vmax.f32 %v2313_v28, %v2314_v12  ;;  %v2259_v22 = vmul.f32 0.0625, %v2235_v13 }
 0x43a   : > { %v2178_v15 = vadd.f32 %v3732_v60, %v2158_v48  ;;  %v2179_v23 = vadd.f32 %v3732_v60, %v2159_v38  ;;  %v2459_v30 = vsel %vm2422_vm12, %v2387_v10, %v2458_v26  ;;  %v2129_v26 = vmul.f32 %v3658_v59, %v3899_v41  ;;  %3014 = vmatpush3.bf16.msra.mxu0 %v3013_v45 }
 0x43b   : > { %v2441_v63 = vsel %vm2422_vm12, %v2315_v51, %v3886_v46  ;;  %v2423_v7 = vsel %vm2422_vm12, %v2259_v22, %v2421_v42  ;;  %v2128_v46 = vmul.f32 %v3658_v59, %v3896_v2 }
 0x43c   : > { %v2236_v16 = vsel %vm355_vm1, %v2178_v15, 0.0  ;;  %v2237_v62 = vsel %vm355_vm1, %v2179_v23, 0.0  ;;  %v2389_v44 = vsel %vm355_vm1, %v2179_v23, inf  ;;  %v2316_v27 = vsel %vm355_vm1, %v2178_v15, -inf }
 0x43d   : > { %v2238_v24 = vadd.f32 %v2237_v62, %v2236_v16  ;;  %v2317_v17 = vsel %vm355_vm1, %v2179_v23, -inf  ;;  %v2388_v31 = vsel %vm355_vm1, %v2178_v15, inf }
 0x43e   : > { %v2318_v29 = vmax.f32 %v2316_v27, %v2317_v17  ;;  %v2390_v43 = vmin.f32 %v2388_v31, %v2389_v44 }
 0x43f   : > { %v2239_v9 = vrot.slane %v2238_v24, 4 }
 0x440   : > { %v2319_v50 = vrot.slane %v2318_v29, 4  ;;  %v2391_v58 = vrot.slane %v2390_v43, 4 }
 0x441   : > { %v3068_v49 = vpop.eup %3067  ;;  %v2240_v19 = vadd.f32 %v2239_v9, %v2238_v24 }
 0x442   : > { %v2160_v37 = vmul.f32 %v3068_v49, %v2128_v46  ;;  %v2161_v6 = vmul.f32 %v3068_v49, %v2129_v26  ;;  %v2320_v54 = vmax.f32 %v2318_v29, %v2319_v50  ;;  %v2392_v20 = vmin.f32 %v2390_v43, %v2391_v58 }
 0x443   : > { %v2241_v33 = vrot.slane %v2240_v19, 2  ;;  %v3083_v58 = vmov 1966171168  }
 0x444   : > { %v2180_v55 = vadd.f32 %v3732_v60, %v2160_v37  ;;  %v2181_v21 = vadd.f32 %v3732_v60, %v2161_v6  ;;  %v2321_v3 = vrot.slane %v2320_v54, 2  ;;  %v2393_v5 = vrot.slane %v2392_v20, 2 }
 0x445   : > { %v2242_v0 = vadd.f32 %v2241_v33, %v2240_v19  ;;  %v2550_v49 = vunpack.c.l.s4 %v3083_v58 }
 0x446   : > { %v2246_v2 = vsel %vm355_vm1, %v2181_v21, 0.0  ;;  %v2322_v32 = vmax.f32 %v2320_v54, %v2321_v3  ;;  %v2325_v59 = vsel %vm355_vm1, %v2180_v55, -inf  ;;  %v2326_v41 = vsel %vm355_vm1, %v2181_v21, -inf }
 0x447   : > { %v2327_v61 = vmax.f32 %v2325_v59, %v2326_v41  ;;  %v2394_v56 = vmin.f32 %v2392_v20, %v2393_v5  ;;  %v2397_v14 = vsel %vm355_vm1, %v2180_v55, inf  ;;  %v2398_v36 = vsel %vm355_vm1, %v2181_v21, inf }
 0x448   : > { %v2323_v42 = vrot.slane %v2322_v32, 1  ;;  %v2399_v4 = vmin.f32 %v2397_v14, %v2398_v36  ;;  %v2243_v57 = vrot.slane %v2242_v0, 1  ;;  %v2245_v60 = vsel %vm355_vm1, %v2180_v55, 0.0 }
 0x449   : > { %v2328_v39 = vrot.slane %v2327_v61, 4  ;;  %v2395_v25 = vrot.slane %v2394_v56, 1  ;;  %v2247_v34 = vadd.f32 %v2246_v2, %v2245_v60  ;;  %v2551_v19 = vunpack.c.0.s8 %v2550_v49 }
 0x44a   : > { %v2324_v11 = vmax.f32 %v2322_v32, %v2323_v42  ;;  %v2400_v1 = vrot.slane %v2399_v4, 4  ;;  %v2244_v28 = vadd.f32 %v2243_v57, %v2242_v0 }
 0x44b   : > { %v2329_v35 = vmax.f32 %v2327_v61, %v2328_v39  ;;  %v2396_v8 = vmin.f32 %v2394_v56, %v2395_v25  ;;  %v2248_v53 = vrot.slane %v2247_v34, 4  ;;  %v2554_v37 = vsub.s32 %v2551_v19, %v3280_v47 }
 0x44c   : > { %v2442_v52 = vsel %vm2424_vm13, %v2324_v11, %v2441_v63  ;;  %v2401_v12 = vmin.f32 %v2399_v4, %v2400_v1  ;;  %v2260_v13 = vmul.f32 0.0625, %v2244_v28 }
 0x44d   : > { %v2330_v48 = vrot.slane %v2329_v35, 2  ;;  %v2460_v38 = vsel %vm2424_vm13, %v2396_v8, %v2459_v30  ;;  %v2249_v10 = vadd.f32 %v2248_v53, %v2247_v34 }
 0x44e   : > { %v2402_v51 = vrot.slane %v2401_v12, 2  ;;  %v2425_v22 = vsel %vm2424_vm13, %v2260_v13, %v2423_v7 }
 0x44f   : > { %v2331_v15 = vmax.f32 %v2329_v35, %v2330_v48  ;;  %v2250_v23 = vrot.slane %v2249_v10, 2 }
 0x450   : > { %v2403_v16 = vmin.f32 %v2401_v12, %v2402_v51 }
 0x451   : > { %v2332_v62 = vrot.slane %v2331_v15, 1  ;;  %v2251_v44 = vadd.f32 %v2250_v23, %v2249_v10 }
 0x452   : > { %v2404_v27 = vrot.slane %v2403_v16, 1 }
 0x453   : > { %v2333_v24 = vmax.f32 %v2331_v15, %v2332_v62  ;;  %v2252_v17 = vrot.slane %v2251_v44, 1 }
 0x454   : > { %v2405_v63 = vmin.f32 %v2403_v16, %v2404_v27 }
 0x455   : > { %v2443_v31 = vsel %vm2426_vm14, %v2333_v24, %v2442_v52  ;;  %v2253_v29 = vadd.f32 %v2252_v17, %v2251_v44 }
 0x456   : > { %2444 = vrot.lane.b32.xlu0 %v2443_v31, %s3081_s27  ;;  %v2461_v43 = vsel %vm2426_vm14, %v2405_v63, %v2460_v38 }
 0x457   : > { %v2261_v30 = vmul.f32 0.0625, %v2253_v29 }
 0x459   : > { %v2427_v9 = vsel %vm2426_vm14, %v2261_v30, %v2425_v22 }
 0x45a   : > { %2462 = vrot.lane.b32.xlu0 %v2461_v43, %s3082_s28 }
 0x4c8   : > { %v2445_v7 = vpop.permute.xlu0 %2444 }
 0x4c9   : > { %v2465_v46 = vsel %vm355_vm1, %v2427_v9, %v2445_v7 }
 0x4cc   : > { %v2463_v26 = vpop.permute.xlu0 %2462 }
 0x4cd   : > { %v2466_v50 = vsel %vm988_vm4, %v2465_v46, %v2463_v26 }
 0x4ce   : > { %2996 = vmatmul.mubr.msk.f32.vlgmr.msra.gmra.mrb[48].mxu0 %vm2473_vm15, %v2466_v50 }
 0x5a1   : > { %v2543_v6 = vpop.f32.mrb[48].mxu0 }
 0x5a2   : > { %v2548_v54 = vcombine.high %v2543_v6, %v2543_v6  ;;  %v2555_v20 = vrot.slane %v2543_v6, %v2554_v37  ;;  %v2997_v33 = vpop.f32.mrb[49].mxu0 }
 0x5a4   : > { %v2562_v55 = vrot.slane %v2548_v54, %v2554_v37  ;;  %v2563_v21 = vcombine.high %v2555_v20, %v2555_v20  ;;  %v2571_v3 = vrot.slane %v2555_v20, %v2554_v37 }
 0x5a6   : > { %v2564_v5 = vcombine.high %v2562_v55, %v2562_v55  ;;  %v2578_v0 = vrot.slane %v2562_v55, %v2554_v37  ;;  %v2585_v2 = vrot.slane %v2563_v21, %v2554_v37  ;;  %v2593_v32 = vcombine.high %v2571_v3, %v2571_v3  ;;  %2606 = vst.msk [vmem:[%s306_s8] sm:$0x1] %vm2605_vm2, %v2571_v3 }
 0x5a8   : > { %v2592_v59 = vrot.slane %v2564_v5, %v2554_v37  ;;  %v2594_v47 = vcombine.high %v2578_v0, %v2578_v0  ;;  %v2595_v41 = vcombine.high %v2585_v2, %v2585_v2  ;;  %2607 = vst.msk [vmem:[%s306_s8 + $0x1] sm:$0x1] %vm2605_vm2, %v2585_v2  ;;  %2608 = vst.msk [vmem:[%s306_s8 + $0x2] sm:$0x1] %vm2605_vm2, %v2593_v32 }
 0x5a9   : > { %2610 = vst.msk [vmem:[%s306_s8 + $0x4] sm:$0x1] %vm2605_vm2, %v2578_v0 }
 0x5aa   : > { %v2596_v61 = vcombine.high %v2592_v59, %v2592_v59  ;;  %2609 = vst.msk [vmem:[%s306_s8 + $0x3] sm:$0x1] %vm2605_vm2, %v2595_v41  ;;  %2611 = vst.msk [vmem:[%s306_s8 + $0x5] sm:$0x1] %vm2605_vm2, %v2592_v59 }
 0x5ab   : > { %2612 = vst.msk [vmem:[%s306_s8 + $0x6] sm:$0x1] %vm2605_vm2, %v2594_v47 }
 0x5ac   : > { %2613 = vst.msk [vmem:[%s306_s8 + $0x7] sm:$0x1] %vm2605_vm2, %v2596_v61 }
 0x5ad PF: > { %s17_s24 = sadd.s32 1, %s3076_s24  }
 0x5ae   : > { %p14_p4 = scmp.ge.s32.totalorder %s17_s24, 4  }
 0x5b0   :  { %16 = sbr.rel (!%p14_p4) target bundleno = 1 (0x1), region = 81 }

</bundles_post_ra>
